<compile_context>
chip_gen: v6e
topology: v6e:2x2x1
jax: 0.10.0
libtpu: 0.0.40
codegen_flags: <defaults>
</compile_context>

<pallas_src>
import jax
import jax.numpy as jnp
from jax.experimental import pallas as pl
from jax.experimental.pallas import tpu as pltpu

HIDDEN = 256
OUT_PAD = 128   # MXU pass width for the final 256->1 layer (padding is free on MXU)
LANE = 128


def _round_up(x, m):
    return ((x + m - 1) // m) * m


# ----------------------------------------------------------------------------
# Kernel: one batch tile, all four layers fused.
# ----------------------------------------------------------------------------
def _critic_kernel(x_ref, a_ref, w1x_ref, w1a_ref, b1_ref, w2_ref, b2_ref,
                   w3_ref, b3_ref, w4_ref, b4_ref, q_ref):
    # fc1: torch's cat([x, a/max_action]) @ W1 realized as two matmuls with a
    # split W1; the 1/max_action scaling is pre-folded into w1a.
    h = (jnp.dot(x_ref[...].astype(jnp.bfloat16), w1x_ref[...],
                 preferred_element_type=jnp.float32)
         + jnp.dot(a_ref[...].astype(jnp.bfloat16), w1a_ref[...],
                   preferred_element_type=jnp.float32)
         + b1_ref[...])
    h = jnp.maximum(h, 0.0)

    # fc2
    h = jnp.dot(h.astype(jnp.bfloat16), w2_ref[...],
                preferred_element_type=jnp.float32) + b2_ref[...]
    h = jnp.maximum(h, 0.0)

    # fc3
    h = jnp.dot(h.astype(jnp.bfloat16), w3_ref[...],
                preferred_element_type=jnp.float32) + b3_ref[...]
    h = jnp.maximum(h, 0.0)

    # q_out: keep MXU N at 128 (zero-padded w4/b4); real value lives in col 0.
    q_full = jnp.dot(h.astype(jnp.bfloat16), w4_ref[...],
                     preferred_element_type=jnp.float32) + b4_ref[...]

    # Repack column 0 into a lane-dense (1, tb//128, 128) block so the HBM
    # write is 4 B/row instead of 512 B/row.  The column->row move is a cheap
    # XLU transpose; the chunk stores are static slices.
    tb = q_full.shape[0]
    qT = q_full.T                                    # (128, tb); row 0 == q col
    for r in range(tb // LANE):                      # small static trip count
        q_ref[0:1, r:r + 1, :] = (
            qT[0:1, r * LANE:(r + 1) * LANE].reshape(1, 1, LANE))


# ----------------------------------------------------------------------------
# One-time parameter preparation (constant transform, done where params live)
# ----------------------------------------------------------------------------
def prepare_critic_params(params, d_xg, max_action):
    """Split W1 into obs/goal rows and action rows (1/max_action folded into
    the action rows), pad the final layer to 128 output lanes, cast matmul
    weights to bf16 (biases stay f32)."""
    w1 = params["w1"]                       # [d_xg + act, 256]
    w1x = w1[:d_xg, :]
    w1a = w1[d_xg:, :] * (1.0 / float(max_action))

    w4p = jnp.zeros((HIDDEN, OUT_PAD), jnp.float32).at[:, :1].set(params["w4"])
    b4p = jnp.zeros((1, OUT_PAD), jnp.float32).at[:, :1].set(params["b4"])

    return dict(
        w1x=w1x.astype(jnp.bfloat16), w1a=w1a.astype(jnp.bfloat16),
        b1=params["b1"].astype(jnp.float32),
        w2=params["w2"].astype(jnp.bfloat16), b2=params["b2"].astype(jnp.float32),
        w3=params["w3"].astype(jnp.bfloat16), b3=params["b3"].astype(jnp.float32),
        w4=w4p.astype(jnp.bfloat16), b4=b4p,
    )


# ----------------------------------------------------------------------------
# Wrapper
# ----------------------------------------------------------------------------
def critic_forward(prepped, x, actions, *, block_b=1024):
    """x: [B, obs+goal] f32, actions: [B, act] f32 -> q: [B, 1] f32."""
    B = x.shape[0]
    d_xg = x.shape[1]
    d_a = actions.shape[1]

    # Batch tile: multiple of 128 (lane-dense repacked output requires it).
    # Once B >= 256, split into >= 2 grid steps so the "parallel" batch axis
    # can be sharded across both TensorCores on dual-TC parts (v7x).
    tb = _round_up(B, LANE)
    if B >= 256:
        tb = _round_up(tb // 2, LANE)
    tb = min(tb, block_b)
    b_pad = _round_up(B, tb)
    grid = (b_pad // tb,)

    if b_pad != B:
        # Pad so no block reads/writes out of bounds; padded rows produce
        # garbage q values which are sliced off below.
        pad = ((0, b_pad - B), (0, 0))
        x = jnp.pad(x, pad)
        actions = jnp.pad(actions, pad)

    weights = (prepped["w1x"], prepped["w1a"], prepped["b1"],
               prepped["w2"], prepped["b2"], prepped["w3"], prepped["b3"],
               prepped["w4"], prepped["b4"])

    # Constant index maps -> weights DMA'd once and stay VMEM-resident.
    weight_specs = [pl.BlockSpec(w.shape, lambda i: (0, 0)) for w in weights]

    flops = 2 * b_pad * (d_xg * HIDDEN + d_a * HIDDEN
                         + 2 * HIDDEN * HIDDEN + HIDDEN * OUT_PAD)
    bytes_accessed = (x.size * x.dtype.itemsize
                      + actions.size * actions.dtype.itemsize
                      + sum(int(w.size) * w.dtype.itemsize for w in weights)
                      + b_pad * 4)

    q_packed = pl.pallas_call(
        _critic_kernel,
        out_shape=jax.ShapeDtypeStruct((grid[0], tb // LANE, LANE),
                                       jnp.float32),
        grid=grid,
        in_specs=[pl.BlockSpec((tb, d_xg), lambda i: (i, 0)),
                  pl.BlockSpec((tb, d_a), lambda i: (i, 0))] + weight_specs,
        out_specs=pl.BlockSpec((1, tb // LANE, LANE), lambda i: (i, 0, 0)),
        compiler_params=pltpu.CompilerParams(
            dimension_semantics=("parallel",)),
        cost_estimate=pl.CostEstimate(flops=flops, transcendentals=0,
                                      bytes_accessed=bytes_accessed),
    )(x, actions, *weights)

    # Element (i, r, c) of the packed output is q for batch row i*tb + r*128 + c,
    # so a row-major flatten restores batch order.
    return q_packed.reshape(-1, 1)[:B]


# ----------------------------------------------------------------------------
# Deterministic parameter init (PyTorch nn.Linear-style uniform bounds)
# ----------------------------------------------------------------------------
def init_params(key, d_in, hidden=HIDDEN):
    dims = [(d_in, hidden), (hidden, hidden), (hidden, hidden), (hidden, 1)]
    params = {}
    for i, (fan_in, fan_out) in enumerate(dims, start=1):
        key, kw, kb = jax.random.split(key, 3)
        bound = 1.0 / jnp.sqrt(fan_in)
        params[f"w{i}"] = jax.random.uniform(kw, (fan_in, fan_out),
                                             jnp.float32, -bound, bound)
        params[f"b{i}"] = jax.random.uniform(kb, (1, fan_out),
                                             jnp.float32, -bound, bound)
    return params


# ----------------------------------------------------------------------------
# Demo / correctness smoke test
# ----------------------------------------------------------------------------
if __name__ == "__main__":
    env_params = {"obs": 10, "goal": 3, "action": 4, "action_max": 2.0}
    B = 2
    d_xg = env_params["obs"] + env_params["goal"]
    d_in = d_xg + env_params["action"]

    key = jax.random.PRNGKey(0)
    kp, kx, ka = jax.random.split(key, 3)
    params = init_params(kp, d_in)
    prepped = prepare_critic_params(params, d_xg, env_params["action_max"])

    x = jax.random.normal(kx, (B, d_xg), jnp.float32)            # obs + goal
    actions = jax.random.normal(ka, (B, env_params["action"]), jnp.float32)

    q = critic_forward(prepped, x, actions)
    q = jax.block_until_ready(q)

    # Pure-JAX f32 reference of the PyTorch forward.
    xa = jnp.concatenate([x, actions / env_params["action_max"]], axis=1)
    h = jnp.maximum(xa @ params["w1"] + params["b1"], 0.0)
    h = jnp.maximum(h @ params["w2"] + params["b2"], 0.0)
    h = jnp.maximum(h @ params["w3"] + params["b3"], 0.0)
    q_ref = h @ params["w4"] + params["b4"]

    assert q.shape == (B, 1)
    # Loose tolerance: kernel uses bf16 matmul operands with f32 accumulation.
    assert jnp.allclose(q, q_ref, atol=5e-2, rtol=5e-2), (q, q_ref)
    print("KERNEL_OK")
</pallas_src>

<mosaic_0001>
module attributes {stable_mosaic.version = 11 : i64} {
  func.func @_critic_kernel(%arg0: i32, %arg1: memref<128x13xf32, #tpu.memory_space<vmem>>, %arg2: memref<128x4xf32, #tpu.memory_space<vmem>>, %arg3: memref<13x256xbf16, #tpu.memory_space<vmem>>, %arg4: memref<4x256xbf16, #tpu.memory_space<vmem>>, %arg5: memref<1x256xf32, #tpu.memory_space<vmem>>, %arg6: memref<256x256xbf16, #tpu.memory_space<vmem>>, %arg7: memref<1x256xf32, #tpu.memory_space<vmem>>, %arg8: memref<256x256xbf16, #tpu.memory_space<vmem>>, %arg9: memref<1x256xf32, #tpu.memory_space<vmem>>, %arg10: memref<256x128xbf16, #tpu.memory_space<vmem>>, %arg11: memref<1x128xf32, #tpu.memory_space<vmem>>, %arg12: memref<1x1x128xf32, #tpu.memory_space<vmem>>) attributes {dimension_semantics = [#tpu.dimension_semantics<parallel>], iteration_bounds = array<i64: 1>, scalar_prefetch = 0 : i64, scratch_operands = 0 : i64, tpu.core_type = #tpu.core_type<tc>, window_params = [{transform_indices = @transform_0, window_bounds = array<i64: 128, 13>}, {transform_indices = @transform_1, window_bounds = array<i64: 128, 4>}, {pipeline_mode = #tpu.pipeline_mode<synchronous>, transform_indices = @transform_2, window_bounds = array<i64: 13, 256>}, {pipeline_mode = #tpu.pipeline_mode<synchronous>, transform_indices = @transform_3, window_bounds = array<i64: 4, 256>}, {pipeline_mode = #tpu.pipeline_mode<synchronous>, transform_indices = @transform_4, window_bounds = array<i64: 1, 256>}, {pipeline_mode = #tpu.pipeline_mode<synchronous>, transform_indices = @transform_5, window_bounds = array<i64: 256, 256>}, {pipeline_mode = #tpu.pipeline_mode<synchronous>, transform_indices = @transform_6, window_bounds = array<i64: 1, 256>}, {pipeline_mode = #tpu.pipeline_mode<synchronous>, transform_indices = @transform_7, window_bounds = array<i64: 256, 256>}, {pipeline_mode = #tpu.pipeline_mode<synchronous>, transform_indices = @transform_8, window_bounds = array<i64: 1, 256>}, {pipeline_mode = #tpu.pipeline_mode<synchronous>, transform_indices = @transform_9, window_bounds = array<i64: 256, 128>}, {pipeline_mode = #tpu.pipeline_mode<synchronous>, transform_indices = @transform_10, window_bounds = array<i64: 1, 128>}, {transform_indices = @transform_11, window_bounds = array<i64: 1, 1, 128>}]} {
    %c0 = arith.constant 0 : index
    %c0_0 = arith.constant 0 : index
    %0 = vector.load %arg1[%c0, %c0_0] : memref<128x13xf32, #tpu.memory_space<vmem>>, vector<128x13xf32>
    %1 = arith.truncf %0 : vector<128x13xf32> to vector<128x13xbf16>
    %c0_1 = arith.constant 0 : index
    %c0_2 = arith.constant 0 : index
    %2 = vector.load %arg3[%c0_1, %c0_2] : memref<13x256xbf16, #tpu.memory_space<vmem>>, vector<13x256xbf16>
    %cst = arith.constant dense<0.000000e+00> : vector<128x256xf32>
    %3 = tpu.matmul %1, %2, %cst {dimension_numbers = #tpu.dot_dimension_numbers<[1], [0], [0], [1], [0, 0, 1, 1], [], []>} : vector<128x13xbf16>, vector<13x256xbf16>, vector<128x256xf32> -> vector<128x256xf32>
    %c0_3 = arith.constant 0 : index
    %c0_4 = arith.constant 0 : index
    %4 = vector.load %arg2[%c0_3, %c0_4] : memref<128x4xf32, #tpu.memory_space<vmem>>, vector<128x4xf32>
    %5 = arith.truncf %4 : vector<128x4xf32> to vector<128x4xbf16>
    %c0_5 = arith.constant 0 : index
    %c0_6 = arith.constant 0 : index
    %6 = vector.load %arg4[%c0_5, %c0_6] : memref<4x256xbf16, #tpu.memory_space<vmem>>, vector<4x256xbf16>
    %cst_7 = arith.constant dense<0.000000e+00> : vector<128x256xf32>
    %7 = tpu.matmul %5, %6, %cst_7 {dimension_numbers = #tpu.dot_dimension_numbers<[1], [0], [0], [1], [0, 0, 1, 1], [], []>} : vector<128x4xbf16>, vector<4x256xbf16>, vector<128x256xf32> -> vector<128x256xf32>
    %8 = arith.addf %3, %7 : vector<128x256xf32>
    %c0_8 = arith.constant 0 : index
    %c0_9 = arith.constant 0 : index
    %9 = vector.load %arg5[%c0_8, %c0_9] : memref<1x256xf32, #tpu.memory_space<vmem>>, vector<1x256xf32>
    %10 = vector.broadcast %9 : vector<1x256xf32> to vector<128x256xf32>
    %11 = arith.addf %8, %10 : vector<128x256xf32>
    %cst_10 = arith.constant 0.000000e+00 : f32
    %12 = vector.broadcast %cst_10 : f32 to vector<128x256xf32>
    %13 = arith.maximumf %11, %12 : vector<128x256xf32>
    %14 = arith.truncf %13 : vector<128x256xf32> to vector<128x256xbf16>
    %c0_11 = arith.constant 0 : index
    %c0_12 = arith.constant 0 : index
    %15 = vector.load %arg6[%c0_11, %c0_12] : memref<256x256xbf16, #tpu.memory_space<vmem>>, vector<256x256xbf16>
    %cst_13 = arith.constant dense<0.000000e+00> : vector<128x256xf32>
    %16 = tpu.matmul %14, %15, %cst_13 {dimension_numbers = #tpu.dot_dimension_numbers<[1], [0], [0], [1], [0, 0, 1, 1], [], []>} : vector<128x256xbf16>, vector<256x256xbf16>, vector<128x256xf32> -> vector<128x256xf32>
    %c0_14 = arith.constant 0 : index
    %c0_15 = arith.constant 0 : index
    %17 = vector.load %arg7[%c0_14, %c0_15] : memref<1x256xf32, #tpu.memory_space<vmem>>, vector<1x256xf32>
    %18 = vector.broadcast %17 : vector<1x256xf32> to vector<128x256xf32>
    %19 = arith.addf %16, %18 : vector<128x256xf32>
    %cst_16 = arith.constant 0.000000e+00 : f32
    %20 = vector.broadcast %cst_16 : f32 to vector<128x256xf32>
    %21 = arith.maximumf %19, %20 : vector<128x256xf32>
    %22 = arith.truncf %21 : vector<128x256xf32> to vector<128x256xbf16>
    %c0_17 = arith.constant 0 : index
    %c0_18 = arith.constant 0 : index
    %23 = vector.load %arg8[%c0_17, %c0_18] : memref<256x256xbf16, #tpu.memory_space<vmem>>, vector<256x256xbf16>
    %cst_19 = arith.constant dense<0.000000e+00> : vector<128x256xf32>
    %24 = tpu.matmul %22, %23, %cst_19 {dimension_numbers = #tpu.dot_dimension_numbers<[1], [0], [0], [1], [0, 0, 1, 1], [], []>} : vector<128x256xbf16>, vector<256x256xbf16>, vector<128x256xf32> -> vector<128x256xf32>
    %c0_20 = arith.constant 0 : index
    %c0_21 = arith.constant 0 : index
    %25 = vector.load %arg9[%c0_20, %c0_21] : memref<1x256xf32, #tpu.memory_space<vmem>>, vector<1x256xf32>
    %26 = vector.broadcast %25 : vector<1x256xf32> to vector<128x256xf32>
    %27 = arith.addf %24, %26 : vector<128x256xf32>
    %cst_22 = arith.constant 0.000000e+00 : f32
    %28 = vector.broadcast %cst_22 : f32 to vector<128x256xf32>
    %29 = arith.maximumf %27, %28 : vector<128x256xf32>
    %30 = arith.truncf %29 : vector<128x256xf32> to vector<128x256xbf16>
    %c0_23 = arith.constant 0 : index
    %c0_24 = arith.constant 0 : index
    %31 = vector.load %arg10[%c0_23, %c0_24] : memref<256x128xbf16, #tpu.memory_space<vmem>>, vector<256x128xbf16>
    %cst_25 = arith.constant dense<0.000000e+00> : vector<128x128xf32>
    %32 = tpu.matmul %30, %31, %cst_25 {dimension_numbers = #tpu.dot_dimension_numbers<[1], [0], [0], [1], [0, 0, 1, 1], [], []>} : vector<128x256xbf16>, vector<256x128xbf16>, vector<128x128xf32> -> vector<128x128xf32>
    %c0_26 = arith.constant 0 : index
    %c0_27 = arith.constant 0 : index
    %33 = vector.load %arg11[%c0_26, %c0_27] : memref<1x128xf32, #tpu.memory_space<vmem>>, vector<1x128xf32>
    %34 = vector.broadcast %33 : vector<1x128xf32> to vector<128x128xf32>
    %35 = arith.addf %32, %34 : vector<128x128xf32>
    %36 = tpu.transpose %35, [1, 0] : vector<128x128xf32> -> vector<128x128xf32>
    %37 = vector.extract_strided_slice %36 {offsets = [0, 0], sizes = [1, 128], strides = [1, 1]} : vector<128x128xf32> to vector<1x128xf32>
    %38 = vector.shape_cast %37 : vector<1x128xf32> to vector<1x1x128xf32>
    %c0_28 = arith.constant 0 : index
    %c0_29 = arith.constant 0 : index
    %c0_30 = arith.constant 0 : index
    %39 = vector.load %arg12[%c0_28, %c0_29, %c0_30] : memref<1x1x128xf32, #tpu.memory_space<vmem>>, vector<1x1x128xf32>
    tpu.vector_store %arg12[%c0_28, %c0_29, %c0_30], %38 {strides = array<i32>} : memref<1x1x128xf32, #tpu.memory_space<vmem>>, vector<1x1x128xf32>,
    return
  }
  func.func @transform_0(%arg0: i32) -> (i32, i32) {
    %c0_i32 = arith.constant 0 : i32
    %c0_i32_0 = arith.constant 0 : i32
    return %arg0, %c0_i32 : i32, i32
  }
  func.func @transform_1(%arg0: i32) -> (i32, i32) {
    %c0_i32 = arith.constant 0 : i32
    %c0_i32_0 = arith.constant 0 : i32
    return %arg0, %c0_i32 : i32, i32
  }
  func.func @transform_2(%arg0: i32) -> (i32, i32) {
    %c0_i32 = arith.constant 0 : i32
    %c0_i32_0 = arith.constant 0 : i32
    %c0_i32_1 = arith.constant 0 : i32
    return %c0_i32, %c0_i32_0 : i32, i32
  }
  func.func @transform_3(%arg0: i32) -> (i32, i32) {
    %c0_i32 = arith.constant 0 : i32
    %c0_i32_0 = arith.constant 0 : i32
    %c0_i32_1 = arith.constant 0 : i32
    return %c0_i32, %c0_i32_0 : i32, i32
  }
  func.func @transform_4(%arg0: i32) -> (i32, i32) {
    %c0_i32 = arith.constant 0 : i32
    %c0_i32_0 = arith.constant 0 : i32
    %c0_i32_1 = arith.constant 0 : i32
    return %c0_i32, %c0_i32_0 : i32, i32
  }
  func.func @transform_5(%arg0: i32) -> (i32, i32) {
    %c0_i32 = arith.constant 0 : i32
    %c0_i32_0 = arith.constant 0 : i32
    %c0_i32_1 = arith.constant 0 : i32
    return %c0_i32, %c0_i32_0 : i32, i32
  }
  func.func @transform_6(%arg0: i32) -> (i32, i32) {
    %c0_i32 = arith.constant 0 : i32
    %c0_i32_0 = arith.constant 0 : i32
    %c0_i32_1 = arith.constant 0 : i32
    return %c0_i32, %c0_i32_0 : i32, i32
  }
  func.func @transform_7(%arg0: i32) -> (i32, i32) {
    %c0_i32 = arith.constant 0 : i32
    %c0_i32_0 = arith.constant 0 : i32
    %c0_i32_1 = arith.constant 0 : i32
    return %c0_i32, %c0_i32_0 : i32, i32
  }
  func.func @transform_8(%arg0: i32) -> (i32, i32) {
    %c0_i32 = arith.constant 0 : i32
    %c0_i32_0 = arith.constant 0 : i32
    %c0_i32_1 = arith.constant 0 : i32
    return %c0_i32, %c0_i32_0 : i32, i32
  }
  func.func @transform_9(%arg0: i32) -> (i32, i32) {
    %c0_i32 = arith.constant 0 : i32
    %c0_i32_0 = arith.constant 0 : i32
    %c0_i32_1 = arith.constant 0 : i32
    return %c0_i32, %c0_i32_0 : i32, i32
  }
  func.func @transform_10(%arg0: i32) -> (i32, i32) {
    %c0_i32 = arith.constant 0 : i32
    %c0_i32_0 = arith.constant 0 : i32
    %c0_i32_1 = arith.constant 0 : i32
    return %c0_i32, %c0_i32_0 : i32, i32
  }
  func.func @transform_11(%arg0: i32) -> (i32, i32, i32) {
    %c0_i32 = arith.constant 0 : i32
    %c0_i32_0 = arith.constant 0 : i32
    %c0_i32_1 = arith.constant 0 : i32
    return %arg0, %c0_i32, %c0_i32_0 : i32, i32, i32
  }
}

</mosaic_0001>

<bundles_post_ra>
// kernel: tpu_custom_call.1
= control target key start
LH: loop header
LB: loop body
LE: loop exit
PB: predicated region body
PF: predicated region fallthrough
CT: control target
= control target key end

     0   :  { %16 = vsyncpa [#allocation3], 0  ;;  %s2398_s0 = inlined_call_operand.vmem [shape: f32[128,13], index: 0, kind: input, shape index: {}]   ;;  %s2399_s1 = inlined_call_operand.vmem [shape: f32[128,4], index: 1, kind: input, shape index: {}]   ;;  %s2400_s2 = inlined_call_operand.vmem [shape: bf16[13,256], index: 2, kind: input, shape index: {}]   ;;  %s2401_s3 = inlined_call_operand.vmem [shape: bf16[4,256], index: 3, kind: input, shape index: {}]   ;;  %s2402_s4 = inlined_call_operand.vmem [shape: f32[1,256], index: 4, kind: input, shape index: {}]   ;;  %s2403_s5 = inlined_call_operand.vmem [shape: bf16[256,256], index: 5, kind: input, shape index: {}]   ;;  %s2404_s6 = inlined_call_operand.vmem [shape: f32[1,256], index: 6, kind: input, shape index: {}]   ;;  %s2405_s7 = inlined_call_operand.hbm [shape: bf16[256,256], index: 7, kind: input, shape index: {}]   ;;  %s2406_s8 = inlined_call_operand.vmem [shape: f32[1,256], index: 8, kind: input, shape index: {}]   ;;  %s2407_s9 = inlined_call_operand.hbm [shape: bf16[256,128], index: 9, kind: input, shape index: {}]   ;;  %s2408_s10 = inlined_call_operand.vmem [shape: f32[1,128], index: 10, kind: input, shape index: {}]   ;;  %s2409_s11 = inlined_call_operand.hbm [shape: f32[1,1,128], index: 11, kind: output, shape index: {}]  }
   0x1   :  { %17 = vsyncpa [#allocation6], 0 }
   0x2   :  { %18 = vsyncpa [#allocation4], 0  ;;  %s1903_s17 = smov [#allocation2]  }
   0x3   :  { %s38_s18 = sshll.u32 %s1903_s17, 4  ;;  %s39_s18 = int_to_ptr.vmem [resolvable:$true] %s38_s18 }
   0x4   :  { %s1845_s19 = scalar_lea.vmem %s39_s18, 4096  ;;  %p1850_p1 = scmp.lt.s32.totalorder %s39_s18, %s39_s18 }
   0x5   :  { %p1846_p0 = scmp.ne.s32.totalorder %s39_s18, %s1845_s19  ;;  %p1851_p2 = scmp.lt.s32.totalorder %s1845_s19, %s1845_s19 }
   0x7   :  { %p1852_p3 = por %p1851_p2, %p1850_p1 }
   0x9   :  { %p1853_p4 = pnand %p1852_p3, %p1846_p0 }
   0xb   :  { %1856 = shalt.err (!%p1853_p4)
}
   0xc   :  { %s1904_s20 = smov 128   ;;  %s1905_s21 = smov 8  }
   0xd   :  { %44 = dma.hbm_to_vmem [thread:$0]  %s2405_s7, 4096, %s39_s18, [#allocation3], %s1904_s20, %s1904_s20, %s1905_s21  }
   0xe   :  { %s1906_s24 = smov [#allocation5]  }
   0xf   :  { %s52_s25 = sshll.u32 %s1906_s24, 4  ;;  %s53_s25 = int_to_ptr.vmem [resolvable:$true] %s52_s25 }
  0x10   :  { %s1865_s26 = scalar_lea.vmem %s53_s25, 2048  ;;  %p1870_p6 = scmp.lt.s32.totalorder %s53_s25, %s53_s25 }
  0x11   :  { %p1866_p5 = scmp.ne.s32.totalorder %s53_s25, %s1865_s26  ;;  %p1871_p7 = scmp.lt.s32.totalorder %s1865_s26, %s1865_s26 }
  0x13   :  { %p1872_p8 = por %p1871_p7, %p1870_p6 }
  0x15   :  { %p1873_p9 = pnand %p1872_p8, %p1866_p5 }
  0x17   :  { %1876 = shalt.err (!%p1873_p9)
}
  0x18   :  { %s1907_s27 = smov 64   ;;  %s1908_s28 = smov 4  }
  0x19   :  { %58 = dma.hbm_to_vmem [thread:$0]  %s2407_s9, 2048, %s53_s25, [#allocation6], %s1907_s27, %s1907_s27, %s1908_s28  }
  0x1a   :  { %1897 = dma.done.wait [#allocation3], 4096  }
  0x1b   :  { %1898 = vsyncadd [#allocation3], 4294963200 }
  0x1c   :  { %1899 = dma.done.wait [#allocation6], 2048  }
  0x1d   :  { %1900 = vsyncadd [#allocation6], 4294965248  ;;  %vm306_vm0 = vcmask 1045504   ;;  %v1909_v0 = vmov 0   ;;  %vm307_vm1 = vcmask 1046528   ;;  %v1910_v1 = vmov 65535  }
  0x1e   :  { %192 = vmatprep.mubr.bf16.mxu0 %v1909_v0  ;;  %348 = vmatprep.mubr.bf16.mxu1 %v1909_v0  ;;  %v308_v2 = vsel %vm306_vm0, 4294967295, %v1910_v1  ;;  %vm153_vm2 = vcmask 1041408   ;;  %v1532_v4 = vld.sshfl [vmem:[%s2401_s3] sm:$0x33 pattern:$0x76325410] }
  0x1f   :  { %v309_v3 = vsel %vm307_vm1, %v308_v2, 0  ;;  %v94_v5 = vld [vmem:[%s2399_s1] sm:$0xff]  ;;  %v127_v6 = vcombine.high %v1532_v4, %v1532_v4  ;;  %v155_v7 = vsel %vm153_vm2, %v1532_v4, 0  ;;  %v95_v10 = vld [vmem:[%s2399_s1 + $0x8] sm:$0xff]  ;;  %vm128_vm3 = vcmask 31744   ;;  %v96_v17 = vld [vmem:[%s2399_s1 + $0x10] sm:$0xff] }
  0x20   :  { %v1722_v8 = vld [vmem:[%s2400_s2 + $0x4] ss:$8 sps:$4 sm:$0x7f]   ;;  %v1724_v9 = vld [vmem:[%s2400_s2] ss:$8 sps:$4 sm:$0x7f]   ;;  %v110_v13 = vpack.c.bf16 %v95_v10, %v94_v5 }
  0x21   :  { %v68_v11 = vld [vmem:[%s2398_s0] sm:$0xff]  ;;  %1533 = vmatprep.subr.msk.bf16.mxu0 %vm153_vm2, %v127_v6  ;;  %v314_v12 = vand.u32 %v1722_v8, %v309_v3  ;;  %v69_v14 = vld [vmem:[%s2398_s0 + $0x8] sm:$0xff]  ;;  %v311_v15 = vand.u32 %v1724_v9, %v309_v3  ;;  %vm281_vm4 = vcmask 105472   ;;  %v97_v18 = vld [vmem:[%s2399_s1 + $0x18] sm:$0xff] }
  0x22   :  { %175 = vmatpush1.bf16.msra.mxu0 %v155_v7  ;;  %v84_v16 = vpack.c.bf16 %v69_v14, %v68_v11  ;;  %v70_v19 = vld [vmem:[%s2398_s0 + $0x10] sm:$0xff]  ;;  %v71_v20 = vld [vmem:[%s2398_s0 + $0x18] sm:$0xff]  ;;  %v111_v21 = vpack.c.bf16 %v97_v18, %v96_v17  ;;  %v98_v25 = vld [vmem:[%s2399_s1 + $0x20] sm:$0xff] }
  0x23   :  { %330 = vmatprep.subr.bf16.mxu1 %v314_v12  ;;  %v85_v22 = vpack.c.bf16 %v71_v20, %v70_v19  ;;  %v1725_v23 = vld [vmem:[%s2403_s5 + $0x70] ss:$8 sps:$4 sm:$0xff]   ;;  %v1727_v24 = vld [vmem:[%s2403_s5 + $0x74] ss:$8 sps:$4 sm:$0xff]   ;;  %v1730_v26 = vld [vmem:[%s2403_s5 + $0x64] ss:$8 sps:$4 sm:$0xff]  }
  0x24   :  { %331 = vmatpush1.bf16.msra.mxu1 %v311_v15  ;;  %725 = vmatprep.subr.bf16.mxu0 %v1727_v24  ;;  %v99_v27 = vld [vmem:[%s2399_s1 + $0x28] sm:$0xff]  ;;  %v72_v29 = vld [vmem:[%s2398_s0 + $0x20] sm:$0xff]  ;;  %v1733_v30 = vld [vmem:[%s2403_s5 + $0x54] ss:$8 sps:$4 sm:$0xff]  }
  0x25   :  { %1534 = vmatmul.mubr.msk.bf16.vlgmr.msra.gmra.mxu0 %vm128_vm3, %v110_v13  ;;  %v1728_v28 = vld [vmem:[%s2403_s5 + $0x60] ss:$8 sps:$4 sm:$0xff]   ;;  %v112_v32 = vpack.c.bf16 %v99_v27, %v98_v25  ;;  %v1731_v33 = vld [vmem:[%s2403_s5 + $0x50] ss:$8 sps:$4 sm:$0xff]   ;;  %v1736_v35 = vld [vmem:[%s2403_s5 + $0x44] ss:$8 sps:$4 sm:$0xff]  }
  0x26   :  { %202 = vmatprep.mubr.bf16.mxu0 %v1909_v0  ;;  %726 = vmatpush1.bf16.msra.mxu0 %v1725_v23  ;;  %v73_v31 = vld [vmem:[%s2398_s0 + $0x28] sm:$0xff]  ;;  %v100_v36 = vld [vmem:[%s2399_s1 + $0x30] sm:$0xff]  ;;  %v101_v37 = vld [vmem:[%s2399_s1 + $0x38] sm:$0xff] }
  0x27   :  { %1544 = vmatmul.mubr.msk.bf16.vlgmr.msra.gmra.mxu1 %vm281_vm4, %v84_v16  ;;  %727 = vmatprep.subr.bf16.mxu0 %v1730_v26  ;;  %v86_v34 = vpack.c.bf16 %v73_v31, %v72_v29  ;;  %v1734_v38 = vld [vmem:[%s2403_s5 + $0x40] ss:$8 sps:$4 sm:$0xff]   ;;  %v74_v39 = vld [vmem:[%s2398_s0 + $0x30] sm:$0xff]  ;;  %v75_v41 = vld [vmem:[%s2398_s0 + $0x38] sm:$0xff]  ;;  %v113_v42 = vpack.c.bf16 %v101_v37, %v100_v36 }
  0x28   :  { %358 = vmatprep.mubr.bf16.mxu1 %v1909_v0  ;;  %v1739_v40 = vld [vmem:[%s2403_s5 + $0x34] ss:$8 sps:$4 sm:$0xff]   ;;  %v1737_v43 = vld [vmem:[%s2403_s5 + $0x30] ss:$8 sps:$4 sm:$0xff]   ;;  %v1742_v44 = vld [vmem:[%s2403_s5 + $0x24] ss:$8 sps:$4 sm:$0xff]   ;;  %v87_v45 = vpack.c.bf16 %v75_v41, %v74_v39 }
  0x29   :  { %v102_v46 = vld [vmem:[%s2399_s1 + $0x40] sm:$0xff]  ;;  %v103_v47 = vld [vmem:[%s2399_s1 + $0x48] sm:$0xff]  ;;  %v1745_v49 = vld [vmem:[%s2403_s5 + $0x14] ss:$8 sps:$4 sm:$0xff]  }
  0x2a   :  { %728 = vmatpush1.bf16.msra.mxu0 %v1728_v28  ;;  %v1740_v48 = vld [vmem:[%s2403_s5 + $0x20] ss:$8 sps:$4 sm:$0xff]   ;;  %v1743_v52 = vld [vmem:[%s2403_s5 + $0x10] ss:$8 sps:$4 sm:$0xff]   ;;  %v114_v53 = vpack.c.bf16 %v103_v47, %v102_v46  ;;  %v1748_v54 = vld [vmem:[%s2403_s5 + $0x4] ss:$8 sps:$4 sm:$0xff]  }
  0x2b   :  { %729 = vmatprep.subr.bf16.mxu0 %v1733_v30  ;;  %v76_v50 = vld [vmem:[%s2398_s0 + $0x40] sm:$0xff]  ;;  %v77_v51 = vld [vmem:[%s2398_s0 + $0x48] sm:$0xff]  ;;  %v104_v56 = vld [vmem:[%s2399_s1 + $0x50] sm:$0xff] }
  0x2c   :  { %v88_v55 = vpack.c.bf16 %v77_v51, %v76_v50  ;;  %v105_v57 = vld [vmem:[%s2399_s1 + $0x58] sm:$0xff]  ;;  %v1746_v58 = vld [vmem:[%s2403_s5] ss:$8 sps:$4 sm:$0xff]   ;;  %v78_v60 = vld [vmem:[%s2398_s0 + $0x50] sm:$0xff] }
  0x2d   :  { %1535 = vmatmul.mubr.msk.bf16.gmra.mxu0 %vm128_vm3, %v111_v21  ;;  %v1751_v59 = vld [vmem:[%s2403_s5 + $0xf4] ss:$8 sps:$4 sm:$0xff]   ;;  %v1749_v62 = vld [vmem:[%s2403_s5 + $0xf0] ss:$8 sps:$4 sm:$0xff]   ;;  %v115_v63 = vpack.c.bf16 %v105_v57, %v104_v56  ;;  %v1754_v1 = vld [vmem:[%s2403_s5 + $0xe4] ss:$8 sps:$4 sm:$0xff]  }
  0x2e   :  { %212 = vmatprep.mubr.bf16.mxu0 %v1909_v0  ;;  %730 = vmatpush1.bf16.msra.mxu0 %v1731_v33  ;;  %v79_v61 = vld [vmem:[%s2398_s0 + $0x58] sm:$0xff]  ;;  %v106_v3 = vld [vmem:[%s2399_s1 + $0x60] sm:$0xff]  ;;  %v107_v4 = vld [vmem:[%s2399_s1 + $0x68] sm:$0xff] }
  0x2f   :  { %1545 = vmatmul.mubr.msk.bf16.gmra.mxu1 %vm281_vm4, %v85_v22  ;;  %731 = vmatprep.subr.bf16.mxu0 %v1736_v35  ;;  %v89_v2 = vpack.c.bf16 %v79_v61, %v78_v60  ;;  %v1752_v5 = vld [vmem:[%s2403_s5 + $0xe0] ss:$8 sps:$4 sm:$0xff]   ;;  %v1757_v6 = vld [vmem:[%s2403_s5 + $0xd4] ss:$8 sps:$4 sm:$0xff]   ;;  %v116_v9 = vpack.c.bf16 %v107_v4, %v106_v3  ;;  %v1755_v10 = vld [vmem:[%s2403_s5 + $0xd0] ss:$8 sps:$4 sm:$0xff]  }
  0x30   :  { %368 = vmatprep.mubr.bf16.mxu1 %v1909_v0  ;;  %v80_v7 = vld [vmem:[%s2398_s0 + $0x60] sm:$0xff]  ;;  %v81_v8 = vld [vmem:[%s2398_s0 + $0x68] sm:$0xff]  ;;  %v108_v13 = vld [vmem:[%s2399_s1 + $0x70] sm:$0xff] }
  0x31   :  { %v90_v11 = vpack.c.bf16 %v81_v8, %v80_v7  ;;  %v1760_v12 = vld [vmem:[%s2403_s5 + $0xc4] ss:$8 sps:$4 sm:$0xff]   ;;  %v109_v14 = vld [vmem:[%s2399_s1 + $0x78] sm:$0xff]  ;;  %v1758_v15 = vld [vmem:[%s2403_s5 + $0xc0] ss:$8 sps:$4 sm:$0xff]  }
  0x32   :  { %732 = vmatpush1.bf16.msra.mxu0 %v1734_v38  ;;  %v82_v16 = vld [vmem:[%s2398_s0 + $0x70] sm:$0xff]  ;;  %v83_v17 = vld [vmem:[%s2398_s0 + $0x78] sm:$0xff]  ;;  %v117_v18 = vpack.c.bf16 %v109_v14, %v108_v13  ;;  %v1766_v21 = vld [vmem:[%s2403_s5 + $0xa4] ss:$8 sps:$4 sm:$0xff]  }
  0x33   :  { %733 = vmatprep.subr.bf16.mxu0 %v1739_v40  ;;  %v91_v19 = vpack.c.bf16 %v83_v17, %v82_v16  ;;  %v1761_v20 = vld [vmem:[%s2403_s5 + $0xb0] ss:$8 sps:$4 sm:$0xff]   ;;  %v1764_v22 = vld [vmem:[%s2403_s5 + $0xa0] ss:$8 sps:$4 sm:$0xff]   ;;  %v1769_v23 = vld [vmem:[%s2403_s5 + $0x94] ss:$8 sps:$4 sm:$0xff]  }
  0x34   :  { %v1767_v24 = vld [vmem:[%s2403_s5 + $0x90] ss:$8 sps:$4 sm:$0xff]   ;;  %v1772_v25 = vld [vmem:[%s2403_s5 + $0x84] ss:$8 sps:$4 sm:$0xff]   ;;  %v1770_v26 = vld [vmem:[%s2403_s5 + $0x80] ss:$8 sps:$4 sm:$0xff]  }
  0x35   :  { %1536 = vmatmul.mubr.msk.bf16.gmra.mxu0 %vm128_vm3, %v112_v32  ;;  %v1773_v27 = vld [vmem:[#allocation2 + $0x70] ss:$8 sps:$4 sm:$0xff]   ;;  %v1775_v28 = vld [vmem:[#allocation2 + $0x74] ss:$8 sps:$4 sm:$0xff]   ;;  %v1778_v29 = vld [vmem:[#allocation2 + $0x64] ss:$8 sps:$4 sm:$0xff]  }
  0x36   :  { %222 = vmatprep.mubr.bf16.mxu0 %v1909_v0  ;;  %734 = vmatpush1.bf16.msra.mxu0 %v1737_v43  ;;  %v1776_v30 = vld [vmem:[#allocation2 + $0x60] ss:$8 sps:$4 sm:$0xff]   ;;  %v1781_v31 = vld [vmem:[#allocation2 + $0x54] ss:$8 sps:$4 sm:$0xff]   ;;  %v1779_v32 = vld [vmem:[#allocation2 + $0x50] ss:$8 sps:$4 sm:$0xff]  }
  0x37   :  { %1546 = vmatmul.mubr.msk.bf16.gmra.mxu1 %vm281_vm4, %v86_v34  ;;  %735 = vmatprep.subr.bf16.mxu0 %v1742_v44  ;;  %v1784_v33 = vld [vmem:[#allocation2 + $0x44] ss:$8 sps:$4 sm:$0xff]   ;;  %v1782_v34 = vld [vmem:[#allocation2 + $0x40] ss:$8 sps:$4 sm:$0xff]   ;;  %v1787_v35 = vld [vmem:[#allocation2 + $0x34] ss:$8 sps:$4 sm:$0xff]  }
  0x38   :  { %378 = vmatprep.mubr.bf16.mxu1 %v1909_v0  ;;  %1090 = vmatprep.subr.bf16.mxu1 %v1775_v28  ;;  %v1785_v36 = vld [vmem:[#allocation2 + $0x30] ss:$8 sps:$4 sm:$0xff]   ;;  %v1790_v37 = vld [vmem:[#allocation2 + $0x24] ss:$8 sps:$4 sm:$0xff]   ;;  %v1788_v38 = vld [vmem:[#allocation2 + $0x20] ss:$8 sps:$4 sm:$0xff]  }
  0x39   :  { %1091 = vmatpush1.bf16.msra.mxu1 %v1773_v27  ;;  %v1793_v39 = vld [vmem:[#allocation2 + $0x14] ss:$8 sps:$4 sm:$0xff]   ;;  %v1791_v40 = vld [vmem:[#allocation2 + $0x10] ss:$8 sps:$4 sm:$0xff]   ;;  %v1796_v41 = vld [vmem:[#allocation2 + $0x4] ss:$8 sps:$4 sm:$0xff]  }
  0x3a   :  { %736 = vmatpush1.bf16.msra.mxu0 %v1740_v48  ;;  %1092 = vmatprep.subr.bf16.mxu1 %v1778_v29  ;;  %v1799_v43 = vld [vmem:[#allocation2 + $0xf4] ss:$8 sps:$4 sm:$0xff]   ;;  %v1797_v44 = vld [vmem:[#allocation2 + $0xf0] ss:$8 sps:$4 sm:$0xff]   ;;  %v1800_v46 = vld [vmem:[#allocation2 + $0xe0] ss:$8 sps:$4 sm:$0xff]  }
  0x3b   :  { %737 = vmatprep.subr.bf16.mxu0 %v1745_v49  ;;  %v1805_v47 = vld [vmem:[#allocation2 + $0xd4] ss:$8 sps:$4 sm:$0xff]   ;;  %v1803_v48 = vld [vmem:[#allocation2 + $0xd0] ss:$8 sps:$4 sm:$0xff]   ;;  %v1808_v49 = vld [vmem:[#allocation2 + $0xc4] ss:$8 sps:$4 sm:$0xff]  }
  0x3c   :  { %v1806_v50 = vld [vmem:[#allocation2 + $0xc0] ss:$8 sps:$4 sm:$0xff]   ;;  %v1811_v51 = vld [vmem:[#allocation2 + $0xb4] ss:$8 sps:$4 sm:$0xff]  }
  0x3d   :  { %1537 = vmatmul.mubr.msk.bf16.gmra.mxu0 %vm128_vm3, %v113_v42  ;;  %1093 = vmatpush1.bf16.msra.mxu1 %v1776_v30  ;;  %v1794_v42 = vld [vmem:[#allocation2] ss:$8 sps:$4 sm:$0xff]  }
  0x3e   :  { %232 = vmatprep.mubr.bf16.mxu0 %v1909_v0  ;;  %738 = vmatpush1.bf16.msra.mxu0 %v1743_v52  ;;  %v1809_v52 = vld [vmem:[#allocation2 + $0xb0] ss:$8 sps:$4 sm:$0xff]   ;;  %v429_v60 = vld [vmem:[%s2402_s4] sm:$0x3] }
  0x3f   :  { %1547 = vmatmul.mubr.msk.bf16.gmra.mxu1 %vm281_vm4, %v87_v45  ;;  %739 = vmatprep.subr.bf16.mxu0 %v1748_v54  ;;  %v1802_v45 = vld [vmem:[#allocation2 + $0xe4] ss:$8 sps:$4 sm:$0xff]  }
  0x40   :  { %388 = vmatprep.mubr.bf16.mxu1 %v1909_v0  ;;  %1094 = vmatprep.subr.bf16.mxu1 %v1781_v31 }
  0x41   :  { %1095 = vmatpush1.bf16.msra.mxu1 %v1779_v32 }
  0x42   :  { %740 = vmatpush1.bf16.msra.mxu0 %v1746_v58  ;;  %1096 = vmatprep.subr.bf16.mxu1 %v1784_v33 }
  0x43   :  { %741 = vmatprep.subr.bf16.mxu0 %v1751_v59 }
  0x45   :  { %1538 = vmatmul.mubr.msk.bf16.gmra.mxu0 %vm128_vm3, %v114_v53  ;;  %1097 = vmatpush1.bf16.msra.mxu1 %v1782_v34  ;;  %v431_v53 = vlaneseq }
  0x46   :  { %242 = vmatprep.mubr.bf16.mxu0 %v1909_v0  ;;  %742 = vmatpush2.bf16.msra.mxu0 %v1749_v62 }
  0x47   :  { %1548 = vmatmul.mubr.msk.bf16.gmra.mxu1 %vm281_vm4, %v88_v55  ;;  %743 = vmatprep.subr.bf16.mxu0 %v1754_v1  ;;  %v432_v54 = vshrl.u32 %v431_v53, 7 }
  0x48   :  { %398 = vmatprep.mubr.bf16.mxu1 %v1909_v0  ;;  %1098 = vmatprep.subr.bf16.mxu1 %v1787_v35 }
  0x49   :  { %1099 = vmatpush1.bf16.msra.mxu1 %v1785_v36  ;;  %v2211_v56 = vsub.s32 1, %v432_v54  ;;  %v2213_v59 = vsub.s32 0, %v432_v54 }
  0x4a   :  { %744 = vmatpush2.bf16.msra.mxu0 %v1752_v5  ;;  %1100 = vmatprep.subr.bf16.mxu1 %v1790_v37 }
  0x4b   :  { %745 = vmatprep.subr.bf16.mxu0 %v1757_v6  ;;  %v2219_v1 = vrot.slane %v429_v60, %v2211_v56  ;;  %v2222_v3 = vrot.slane %v429_v60, %v2213_v59 }
  0x4d   :  { %1539 = vmatmul.mubr.msk.bf16.gmra.mxu0 %vm128_vm3, %v115_v63  ;;  %1101 = vmatpush1.bf16.msra.mxu1 %v1788_v38 }
  0x4e   :  { %252 = vmatprep.mubr.bf16.mxu0 %v1909_v0  ;;  %746 = vmatpush2.bf16.msra.mxu0 %v1755_v10 }
  0x4f   :  { %1549 = vmatmul.mubr.msk.bf16.gmra.mxu1 %vm281_vm4, %v89_v2  ;;  %747 = vmatprep.subr.bf16.mxu0 %v1760_v12 }
  0x50   :  { %408 = vmatprep.mubr.bf16.mxu1 %v1909_v0  ;;  %1102 = vmatprep.subr.bf16.mxu1 %v1793_v39 }
  0x51   :  { %1103 = vmatpush1.bf16.msra.mxu1 %v1791_v40 }
  0x52   :  { %748 = vmatpush2.bf16.msra.mxu0 %v1758_v15  ;;  %1104 = vmatprep.subr.bf16.mxu1 %v1796_v41 }
  0x55   :  { %1540 = vmatmul.mubr.msk.bf16.gmra.mxu0 %vm128_vm3, %v116_v9  ;;  %1105 = vmatpush1.bf16.msra.mxu1 %v1794_v42 }
  0x56   :  { %262 = vmatprep.mubr.bf16.mxu0 %v1909_v0  ;;  %1106 = vmatprep.subr.bf16.mxu1 %v1799_v43 }
  0x57   :  { %1550 = vmatmul.mubr.msk.bf16.gmra.mxu1 %vm281_vm4, %v90_v11 }
  0x58   :  { %418 = vmatprep.mubr.bf16.mxu1 %v1909_v0  ;;  %v1763_v0 = vld [vmem:[%s2403_s5 + $0xb4] ss:$8 sps:$4 sm:$0xff]  }
  0x59   :  { %749 = vmatprep.subr.bf16.mxu0 %v1763_v0  ;;  %1107 = vmatpush2.bf16.msra.mxu1 %v1797_v44 }
  0x5a   :  { %750 = vmatpush2.bf16.msra.mxu0 %v1761_v20  ;;  %1108 = vmatprep.subr.bf16.mxu1 %v1802_v45 }
  0x5b   :  { %751 = vmatprep.subr.bf16.mxu0 %v1766_v21 }
  0x5d   :  { %1541 = vmatmul.mubr.msk.bf16.gmra.mxu0 %vm128_vm3, %v117_v18  ;;  %1109 = vmatpush2.bf16.msra.mxu1 %v1800_v46 }
  0x5e   :  { %752 = vmatpush2.bf16.msra.mxu0 %v1764_v22  ;;  %1110 = vmatprep.subr.bf16.mxu1 %v1805_v47 }
  0x5f   :  { %1551 = vmatmul.mubr.msk.bf16.gmra.mxu1 %vm281_vm4, %v91_v19  ;;  %753 = vmatprep.subr.bf16.mxu0 %v1769_v23 }
  0x61   :  { %1111 = vmatpush2.bf16.msra.mxu1 %v1803_v48 }
  0x62   :  { %754 = vmatpush2.bf16.msra.mxu0 %v1767_v24  ;;  %1112 = vmatprep.subr.bf16.mxu1 %v1808_v49 }
  0x63   :  { %755 = vmatprep.subr.bf16.mxu0 %v1772_v25 }
  0x65   :  { %1113 = vmatpush2.bf16.msra.mxu1 %v1806_v50 }
  0x66   :  { %756 = vmatpush2.bf16.msra.mxu0 %v1770_v26  ;;  %1114 = vmatprep.subr.bf16.mxu1 %v1811_v51 }
  0x69   :  { %1115 = vmatpush2.bf16.msra.mxu1 %v1809_v52 }
  0xe5   :  { %v194_v55 = vpop.f32.mrf.mxu0 }
  0xe7   :  { %v196_v57 = vpop.f32.mrf.mxu0  ;;  %v350_v58 = vpop.f32.mrf.mxu1 }
  0xe8   :  { %v351_v2 = vadd.f32 %v350_v58, %v194_v55 }
  0xe9   :  { %v198_v61 = vpop.f32.mrf.mxu0  ;;  %v352_v62 = vpop.f32.mrf.mxu1 }
  0xea   :  { %v353_v63 = vadd.f32 %v352_v62, %v196_v57  ;;  %v441_v12 = vadd.f32 %v2222_v3, %v351_v2 }
  0xeb   :  { %v200_v4 = vpop.f32.mrf.mxu0  ;;  %v354_v5 = vpop.f32.mrf.mxu1 }
  0xec   :  { %v355_v6 = vadd.f32 %v354_v5, %v198_v61  ;;  %v442_v9 = vadd.f32 %v2219_v1, %v353_v63  ;;  %v473_v21 = vmax.f32 %v441_v12, 0.0 }
  0xed   :  { %v204_v7 = vpop.f32.mrf.mxu0  ;;  %v356_v8 = vpop.f32.mrf.mxu1 }
  0xee   :  { %v443_v10 = vadd.f32 %v2222_v3, %v355_v6  ;;  %v357_v11 = vadd.f32 %v356_v8, %v200_v4  ;;  %v474_v19 = vmax.f32 %v442_v9, 0.0 }
  0xef   :  { %v206_v13 = vpop.f32.mrf.mxu0  ;;  %v360_v14 = vpop.f32.mrf.mxu1 }
  0xf0   :  { %v444_v15 = vadd.f32 %v2219_v1, %v357_v11  ;;  %v475_v16 = vmax.f32 %v443_v10, 0.0  ;;  %v361_v22 = vadd.f32 %v360_v14, %v204_v7 }
  0xf1   :  { %v208_v17 = vpop.f32.mrf.mxu0  ;;  %v362_v18 = vpop.f32.mrf.mxu1 }
  0xf2   :  { %v476_v20 = vmax.f32 %v444_v15, 0.0  ;;  %v363_v0 = vadd.f32 %v362_v18, %v206_v13  ;;  %v505_v27 = vpack.c.bf16 %v475_v16, %v473_v21  ;;  %v445_v33 = vadd.f32 %v2222_v3, %v361_v22 }
  0xf3   :  { %v210_v23 = vpop.f32.mrf.mxu0  ;;  %v364_v24 = vpop.f32.mrf.mxu1 }
  0xf4   :  { %v365_v25 = vadd.f32 %v364_v24, %v208_v17  ;;  %v506_v26 = vpack.c.bf16 %v476_v20, %v474_v19  ;;  %v446_v30 = vadd.f32 %v2219_v1, %v363_v0  ;;  %v477_v43 = vmax.f32 %v445_v33, 0.0 }
  0xf5   :  { %v214_v28 = vpop.f32.mrf.mxu0  ;;  %v366_v29 = vpop.f32.mrf.mxu1 }
  0xf6   :  { %v447_v31 = vadd.f32 %v2222_v3, %v365_v25  ;;  %v367_v32 = vadd.f32 %v366_v29, %v210_v23  ;;  %757 = vmatprep.mubr.bf16.mxu0 %v506_v26  ;;  %v478_v40 = vmax.f32 %v446_v30, 0.0 }
  0xf7   :  { %v216_v34 = vpop.f32.mrf.mxu0  ;;  %v370_v35 = vpop.f32.mrf.mxu1  ;;  %758 = vmatmul.mubr.bf16.vlgmr.msra.gmra.mxu0 %v505_v27 }
  0xf8   :  { %v448_v36 = vadd.f32 %v2219_v1, %v367_v32  ;;  %v479_v37 = vmax.f32 %v447_v31, 0.0  ;;  %v371_v44 = vadd.f32 %v370_v35, %v214_v28 }
  0xf9   :  { %v218_v38 = vpop.f32.mrf.mxu0  ;;  %v372_v39 = vpop.f32.mrf.mxu1 }
  0xfa   :  { %v480_v41 = vmax.f32 %v448_v36, 0.0  ;;  %v373_v42 = vadd.f32 %v372_v39, %v216_v34  ;;  %v507_v51 = vpack.c.bf16 %v479_v37, %v477_v43  ;;  %v449_v55 = vadd.f32 %v2222_v3, %v371_v44 }
  0xfb   :  { %v220_v45 = vpop.f32.mrf.mxu0  ;;  %v374_v46 = vpop.f32.mrf.mxu1 }
  0xfc   :  { %v375_v47 = vadd.f32 %v374_v46, %v218_v38  ;;  %v508_v48 = vpack.c.bf16 %v480_v41, %v478_v40  ;;  %v450_v52 = vadd.f32 %v2219_v1, %v373_v42  ;;  %v481_v6 = vmax.f32 %v449_v55, 0.0 }
  0xfd   :  { %v224_v49 = vpop.f32.mrf.mxu0  ;;  %v376_v50 = vpop.f32.mrf.mxu1 }
  0xfe   :  { %v451_v53 = vadd.f32 %v2222_v3, %v375_v47  ;;  %v377_v54 = vadd.f32 %v376_v50, %v220_v45  ;;  %767 = vmatprep.mubr.bf16.mxu0 %v508_v48  ;;  %v482_v2 = vmax.f32 %v450_v52, 0.0 }
  0xff   :  { %v226_v57 = vpop.f32.mrf.mxu0  ;;  %v380_v58 = vpop.f32.mrf.mxu1  ;;  %768 = vmatmul.mubr.bf16.gmra.mxu0 %v507_v51 }
 0x100   :  { %v452_v60 = vadd.f32 %v2219_v1, %v377_v54  ;;  %v483_v61 = vmax.f32 %v451_v53, 0.0  ;;  %v381_v7 = vadd.f32 %v380_v58, %v224_v49 }
 0x101   :  { %v228_v62 = vpop.f32.mrf.mxu0  ;;  %v382_v63 = vpop.f32.mrf.mxu1 }
 0x102   :  { %v484_v4 = vmax.f32 %v452_v60, 0.0  ;;  %v383_v5 = vadd.f32 %v382_v63, %v226_v57  ;;  %v509_v14 = vpack.c.bf16 %v483_v61, %v481_v6  ;;  %v453_v18 = vadd.f32 %v2222_v3, %v381_v7 }
 0x103   :  { %v230_v8 = vpop.f32.mrf.mxu0  ;;  %v384_v9 = vpop.f32.mrf.mxu1 }
 0x104   :  { %v385_v10 = vadd.f32 %v384_v9, %v228_v62  ;;  %v510_v11 = vpack.c.bf16 %v484_v4, %v482_v2  ;;  %v454_v15 = vadd.f32 %v2219_v1, %v383_v5  ;;  %v485_v27 = vmax.f32 %v453_v18, 0.0 }
 0x105   :  { %v234_v12 = vpop.f32.mrf.mxu0  ;;  %v386_v13 = vpop.f32.mrf.mxu1 }
 0x106   :  { %v455_v16 = vadd.f32 %v2222_v3, %v385_v10  ;;  %v387_v17 = vadd.f32 %v386_v13, %v230_v8  ;;  %777 = vmatprep.mubr.bf16.mxu0 %v510_v11  ;;  %v486_v24 = vmax.f32 %v454_v15, 0.0 }
 0x107   :  { %v236_v19 = vpop.f32.mrf.mxu0  ;;  %v390_v20 = vpop.f32.mrf.mxu1  ;;  %778 = vmatmul.mubr.bf16.gmra.mxu0 %v509_v14 }
 0x108   :  { %v456_v0 = vadd.f32 %v2219_v1, %v387_v17  ;;  %v487_v21 = vmax.f32 %v455_v16, 0.0  ;;  %v391_v28 = vadd.f32 %v390_v20, %v234_v12 }
 0x109   :  { %v238_v22 = vpop.f32.mrf.mxu0  ;;  %v392_v23 = vpop.f32.mrf.mxu1 }
 0x10a   :  { %v488_v25 = vmax.f32 %v456_v0, 0.0  ;;  %v393_v26 = vadd.f32 %v392_v23, %v236_v19  ;;  %v511_v35 = vpack.c.bf16 %v487_v21, %v485_v27  ;;  %v457_v39 = vadd.f32 %v2222_v3, %v391_v28 }
 0x10b   :  { %v240_v29 = vpop.f32.mrf.mxu0  ;;  %v394_v30 = vpop.f32.mrf.mxu1 }
 0x10c   :  { %v395_v31 = vadd.f32 %v394_v30, %v238_v22  ;;  %v512_v32 = vpack.c.bf16 %v488_v25, %v486_v24  ;;  %v458_v36 = vadd.f32 %v2219_v1, %v393_v26  ;;  %v489_v49 = vmax.f32 %v457_v39, 0.0 }
 0x10d   :  { %v244_v33 = vpop.f32.mrf.mxu0  ;;  %v396_v34 = vpop.f32.mrf.mxu1 }
 0x10e   :  { %v459_v37 = vadd.f32 %v2222_v3, %v395_v31  ;;  %v397_v38 = vadd.f32 %v396_v34, %v240_v29  ;;  %787 = vmatprep.mubr.bf16.mxu0 %v512_v32  ;;  %v490_v46 = vmax.f32 %v458_v36, 0.0 }
 0x10f   :  { %v246_v40 = vpop.f32.mrf.mxu0  ;;  %v400_v41 = vpop.f32.mrf.mxu1  ;;  %788 = vmatmul.mubr.bf16.gmra.mxu0 %v511_v35 }
 0x110   :  { %v460_v42 = vadd.f32 %v2219_v1, %v397_v38  ;;  %v491_v43 = vmax.f32 %v459_v37, 0.0  ;;  %v401_v50 = vadd.f32 %v400_v41, %v244_v33 }
 0x111   :  { %v248_v44 = vpop.f32.mrf.mxu0  ;;  %v402_v45 = vpop.f32.mrf.mxu1 }
 0x112   :  { %v492_v47 = vmax.f32 %v460_v42, 0.0  ;;  %v403_v48 = vadd.f32 %v402_v45, %v246_v40  ;;  %v513_v58 = vpack.c.bf16 %v491_v43, %v489_v49  ;;  %v461_v63 = vadd.f32 %v2222_v3, %v401_v50 }
 0x113   :  { %v250_v51 = vpop.f32.mrf.mxu0  ;;  %v404_v52 = vpop.f32.mrf.mxu1 }
 0x114   :  { %v405_v53 = vadd.f32 %v404_v52, %v248_v44  ;;  %v514_v54 = vpack.c.bf16 %v492_v47, %v490_v46  ;;  %v462_v60 = vadd.f32 %v2219_v1, %v403_v48  ;;  %v493_v12 = vmax.f32 %v461_v63, 0.0  ;;  %v1814_v52 = vld [vmem:[#allocation2 + $0xa4] ss:$8 sps:$4 sm:$0xff]  }
 0x115   :  { %v254_v55 = vpop.f32.mrf.mxu0  ;;  %v406_v57 = vpop.f32.mrf.mxu1  ;;  %1116 = vmatprep.subr.bf16.mxu1 %v1814_v52  ;;  %v2256_v63 = vld [vmem:[#allocation5 + $0x28] sm:$0xff]  }
 0x116   :  { %v463_v61 = vadd.f32 %v2222_v3, %v405_v53  ;;  %v407_v62 = vadd.f32 %v406_v57, %v250_v51  ;;  %797 = vmatprep.mubr.bf16.mxu0 %v514_v54  ;;  %v494_v9 = vmax.f32 %v462_v60, 0.0  ;;  %v1812_v53 = vld [vmem:[#allocation2 + $0xa0] ss:$8 sps:$4 sm:$0xff]   ;;  %v1817_v54 = vld [vmem:[#allocation2 + $0x94] ss:$8 sps:$4 sm:$0xff]  }
 0x117   :  { %v256_v2 = vpop.f32.mrf.mxu0  ;;  %v410_v4 = vpop.f32.mrf.mxu1  ;;  %798 = vmatmul.mubr.bf16.gmra.mxu0 %v513_v58  ;;  %1117 = vmatpush2.bf16.msra.mxu1 %v1812_v53  ;;  %v1818_v57 = vld [vmem:[#allocation2 + $0x80] ss:$8 sps:$4 sm:$0xff]   ;;  %v1822_v58 = vld [vmem:[#allocation5 + $0x38] sm:$0xff]   ;;  %v1823_v60 = vld [vmem:[#allocation5 + $0x70] sm:$0xff]  }
 0x118   :  { %v464_v5 = vadd.f32 %v2219_v1, %v407_v62  ;;  %v495_v6 = vmax.f32 %v463_v61, 0.0  ;;  %v411_v13 = vadd.f32 %v410_v4, %v254_v55  ;;  %v1815_v55 = vld [vmem:[#allocation2 + $0x90] ss:$8 sps:$4 sm:$0xff]   ;;  %1118 = vmatprep.subr.bf16.mxu1 %v1817_v54  ;;  %v1825_v62 = vld [vmem:[#allocation5 + $0x68] sm:$0xff]   ;;  %v2261_v4 = vld [vmem:[#allocation5 + $0x20] sm:$0xff]  }
 0x119   :  { %v258_v7 = vpop.f32.mrf.mxu0  ;;  %v412_v8 = vpop.f32.mrf.mxu1  ;;  %v1824_v61 = vld [vmem:[#allocation5 + $0x30] sm:$0xff]  }
 0x11a   :  { %v496_v10 = vmax.f32 %v464_v5, 0.0  ;;  %v413_v11 = vadd.f32 %v412_v8, %v256_v2  ;;  %v515_v20 = vpack.c.bf16 %v495_v6, %v493_v12  ;;  %v465_v23 = vadd.f32 %v2222_v3, %v411_v13  ;;  %v2258_v2 = vld [vmem:[#allocation5 + $0x60] sm:$0xff]   ;;  %v2264_v5 = vld [vmem:[#allocation5 + $0x58] sm:$0xff]   ;;  %v2273_v8 = vld [vmem:[#allocation5 + $0x10] sm:$0xff]  }
 0x11b   :  { %v260_v14 = vpop.f32.mrf.mxu0  ;;  %v414_v15 = vpop.f32.mrf.mxu1  ;;  %1119 = vmatpush2.bf16.msra.mxu1 %v1815_v55  ;;  %v2267_v6 = vld [vmem:[#allocation5 + $0x18] sm:$0xff]  }
 0x11c   :  { %v415_v16 = vadd.f32 %v414_v15, %v258_v7  ;;  %v516_v17 = vpack.c.bf16 %v496_v10, %v494_v9  ;;  %v466_v0 = vadd.f32 %v2219_v1, %v413_v11  ;;  %v497_v33 = vmax.f32 %v465_v23, 0.0  ;;  %v2270_v7 = vld [vmem:[#allocation5 + $0x50] sm:$0xff]   ;;  %v2276_v9 = vld [vmem:[#allocation5 + $0x48] sm:$0xff]   ;;  %v553_v11 = vld [vmem:[%s2404_s6] sm:$0x3] }
 0x11d   :  { %v264_v18 = vpop.f32.mrf.mxu0  ;;  %v416_v19 = vpop.f32.mrf.mxu1  ;;  %v2279_v10 = vld [vmem:[#allocation5 + $0x8] sm:$0xff]   ;;  %v2287_v13 = vrot.slane %v553_v11, %v2211_v56 }
 0x11e   :  { %v467_v21 = vadd.f32 %v2222_v3, %v415_v16  ;;  %v417_v22 = vadd.f32 %v416_v19, %v260_v14  ;;  %807 = vmatprep.mubr.bf16.mxu0 %v516_v17  ;;  %v498_v30 = vmax.f32 %v466_v0, 0.0  ;;  %v2290_v14 = vrot.slane %v553_v11, %v2213_v59 }
 0x11f   :  { %v266_v24 = vpop.f32.mrf.mxu0  ;;  %v420_v25 = vpop.f32.mrf.mxu1  ;;  %808 = vmatmul.mubr.bf16.gmra.mxu0 %v515_v20 }
 0x120   :  { %v468_v26 = vadd.f32 %v2219_v1, %v417_v22  ;;  %v499_v27 = vmax.f32 %v467_v21, 0.0  ;;  %v421_v34 = vadd.f32 %v420_v25, %v264_v18 }
 0x121   :  { %v268_v28 = vpop.f32.mrf.mxu0  ;;  %v422_v29 = vpop.f32.mrf.mxu1 }
 0x122   :  { %v500_v31 = vmax.f32 %v468_v26, 0.0  ;;  %v423_v32 = vadd.f32 %v422_v29, %v266_v24  ;;  %v517_v40 = vpack.c.bf16 %v499_v27, %v497_v33  ;;  %v469_v44 = vadd.f32 %v2222_v3, %v421_v34 }
 0x123   :  { %v270_v35 = vpop.f32.mrf.mxu0  ;;  %v424_v36 = vpop.f32.mrf.mxu1 }
 0x124   :  { %v425_v37 = vadd.f32 %v424_v36, %v268_v28  ;;  %v518_v38 = vpack.c.bf16 %v500_v31, %v498_v30  ;;  %v470_v41 = vadd.f32 %v2219_v1, %v423_v32  ;;  %v501_v49 = vmax.f32 %v469_v44, 0.0 }
 0x125   :  { %v426_v39 = vpop.f32.mrf.mxu1 }
 0x126   :  { %v471_v42 = vadd.f32 %v2222_v3, %v425_v37  ;;  %v427_v43 = vadd.f32 %v426_v39, %v270_v35  ;;  %817 = vmatprep.mubr.bf16.mxu0 %v518_v38  ;;  %v502_v47 = vmax.f32 %v470_v41, 0.0  ;;  %v1820_v3 = vld [vmem:[#allocation2 + $0x84] ss:$8 sps:$4 sm:$0xff]  }
 0x127   :  { %818 = vmatmul.mubr.bf16.gmra.mxu0 %v517_v40  ;;  %1120 = vmatprep.subr.bf16.mxu1 %v1820_v3 }
 0x128   :  { %v472_v45 = vadd.f32 %v2219_v1, %v427_v43  ;;  %v503_v46 = vmax.f32 %v471_v42, 0.0  ;;  %1121 = vmatpush2.bf16.msra.mxu1 %v1818_v57  ;;  %v1821_v1 = vld [vmem:[#allocation5 + $0x78] sm:$0xff]  }
 0x129   :  { %1633 = vmatprep.subr.bf16.mxu0 %v1821_v1  ;;  %1697 = vmatprep.subr.bf16.mxu1 %v1821_v1 }
 0x12a   :  { %v504_v48 = vmax.f32 %v472_v45, 0.0  ;;  %v519_v51 = vpack.c.bf16 %v503_v46, %v501_v49  ;;  %1634 = vmatpush3.bf16.msra.mxu0 %v1822_v58 }
 0x12b   :  { %1635 = vmatprep.subr.bf16.mxu0 %v1823_v60 }
 0x12c   :  { %v520_v50 = vpack.c.bf16 %v504_v48, %v502_v47 }
 0x12e   :  { %827 = vmatprep.mubr.bf16.mxu0 %v520_v50  ;;  %1636 = vmatpush3.bf16.msra.mxu0 %v1824_v61 }
 0x12f   :  { %828 = vmatmul.mubr.bf16.gmra.mxu0 %v519_v51  ;;  %1637 = vmatprep.subr.bf16.mxu0 %v1825_v62 }
 0x132   :  { %1638 = vmatpush3.bf16.msra.mxu0 %v2256_v63 }
 0x133   :  { %1639 = vmatprep.subr.bf16.mxu0 %v2258_v2 }
 0x136   :  { %1640 = vmatpush3.bf16.msra.mxu0 %v2261_v4 }
 0x137   :  { %1641 = vmatprep.subr.bf16.mxu0 %v2264_v5 }
 0x13a   :  { %1642 = vmatpush3.bf16.msra.mxu0 %v2267_v6 }
 0x13b   :  { %1643 = vmatprep.subr.bf16.mxu0 %v2270_v7 }
 0x13e   :  { %1644 = vmatpush3.bf16.msra.mxu0 %v2273_v8 }
 0x13f   :  { %1645 = vmatprep.subr.bf16.mxu0 %v2276_v9 }
 0x142   :  { %1646 = vmatpush3.bf16.msra.mxu0 %v2279_v10 }
 0x1b7   :  { %v759_v12 = vpop.f32.mrf.mxu0 }
 0x1b8   :  { %v760_v19 = vadd.f32 %v759_v12, %v2290_v14 }
 0x1b9   :  { %v761_v15 = vpop.f32.mrf.mxu0 }
 0x1ba   :  { %v762_v17 = vadd.f32 %v761_v15, %v2287_v13  ;;  %v838_v25 = vmax.f32 %v760_v19, 0.0 }
 0x1bb   :  { %v763_v16 = vpop.f32.mrf.mxu0 }
 0x1bc   :  { %v764_v18 = vadd.f32 %v763_v16, %v2290_v14  ;;  %v839_v23 = vmax.f32 %v762_v17, 0.0 }
 0x1bd   :  { %v765_v20 = vpop.f32.mrf.mxu0 }
 0x1be   :  { %v766_v0 = vadd.f32 %v765_v20, %v2287_v13  ;;  %v840_v21 = vmax.f32 %v764_v18, 0.0 }
 0x1bf   :  { %v769_v22 = vpop.f32.mrf.mxu0 }
 0x1c0   :  { %v841_v24 = vmax.f32 %v766_v0, 0.0  ;;  %v870_v28 = vpack.c.bf16 %v840_v21, %v838_v25  ;;  %v770_v32 = vadd.f32 %v769_v22, %v2290_v14 }
 0x1c1   :  { %v771_v26 = vpop.f32.mrf.mxu0 }
 0x1c2   :  { %v871_v27 = vpack.c.bf16 %v841_v24, %v839_v23  ;;  %v772_v30 = vadd.f32 %v771_v26, %v2287_v13  ;;  %v842_v39 = vmax.f32 %v770_v32, 0.0 }
 0x1c3   :  { %v773_v29 = vpop.f32.mrf.mxu0 }
 0x1c4   :  { %v774_v31 = vadd.f32 %v773_v29, %v2290_v14  ;;  %1122 = vmatprep.mubr.bf16.mxu1 %v871_v27  ;;  %v843_v37 = vmax.f32 %v772_v30, 0.0 }
 0x1c5   :  { %v775_v33 = vpop.f32.mrf.mxu0  ;;  %1123 = vmatmul.mubr.bf16.vlgmr.msra.gmra.mxu1 %v870_v28 }
 0x1c6   :  { %v776_v34 = vadd.f32 %v775_v33, %v2287_v13  ;;  %1705 = vmatpush3.bf16.msra.mxu1 %v1822_v58  ;;  %v844_v35 = vmax.f32 %v774_v31, 0.0 }
 0x1c7   :  { %v779_v36 = vpop.f32.mrf.mxu0  ;;  %1698 = vmatprep.subr.bf16.mxu1 %v1823_v60 }
 0x1c8   :  { %v845_v38 = vmax.f32 %v776_v34, 0.0  ;;  %v872_v42 = vpack.c.bf16 %v844_v35, %v842_v39  ;;  %v780_v46 = vadd.f32 %v779_v36, %v2290_v14 }
 0x1c9   :  { %v781_v40 = vpop.f32.mrf.mxu0 }
 0x1ca   :  { %v873_v41 = vpack.c.bf16 %v845_v38, %v843_v37  ;;  %1706 = vmatpush3.bf16.msra.mxu1 %v1824_v61  ;;  %v782_v44 = vadd.f32 %v781_v40, %v2287_v13  ;;  %v846_v53 = vmax.f32 %v780_v46, 0.0 }
 0x1cb   :  { %v783_v43 = vpop.f32.mrf.mxu0  ;;  %1699 = vmatprep.subr.bf16.mxu1 %v1825_v62 }
 0x1cc   :  { %v784_v45 = vadd.f32 %v783_v43, %v2290_v14  ;;  %1132 = vmatprep.mubr.bf16.mxu1 %v873_v41  ;;  %v847_v51 = vmax.f32 %v782_v44, 0.0 }
 0x1cd   :  { %v785_v47 = vpop.f32.mrf.mxu0  ;;  %1133 = vmatmul.mubr.bf16.gmra.mxu1 %v872_v42 }
 0x1ce   :  { %v786_v48 = vadd.f32 %v785_v47, %v2287_v13  ;;  %1707 = vmatpush3.bf16.msra.mxu1 %v2256_v63  ;;  %v848_v49 = vmax.f32 %v784_v45, 0.0 }
 0x1cf   :  { %v789_v50 = vpop.f32.mrf.mxu0  ;;  %1700 = vmatprep.subr.bf16.mxu1 %v2258_v2 }
 0x1d0   :  { %v849_v52 = vmax.f32 %v786_v48, 0.0  ;;  %v874_v3 = vpack.c.bf16 %v848_v49, %v846_v53  ;;  %v790_v60 = vadd.f32 %v789_v50, %v2290_v14 }
 0x1d1   :  { %v791_v54 = vpop.f32.mrf.mxu0 }
 0x1d2   :  { %v875_v55 = vpack.c.bf16 %v849_v52, %v847_v51  ;;  %1708 = vmatpush3.bf16.msra.mxu1 %v2261_v4  ;;  %v792_v1 = vadd.f32 %v791_v54, %v2287_v13 }
 0x1d3   :  { %v793_v57 = vpop.f32.mrf.mxu0  ;;  %1701 = vmatprep.subr.bf16.mxu1 %v2264_v5  ;;  %v850_v5 = vmax.f32 %v790_v60, 0.0 }
 0x1d4   :  { %v794_v58 = vadd.f32 %v793_v57, %v2290_v14  ;;  %1142 = vmatprep.mubr.bf16.mxu1 %v875_v55  ;;  %v851_v4 = vmax.f32 %v792_v1, 0.0 }
 0x1d5   :  { %v795_v61 = vpop.f32.mrf.mxu0  ;;  %1143 = vmatmul.mubr.bf16.gmra.mxu1 %v874_v3 }
 0x1d6   :  { %v796_v62 = vadd.f32 %v795_v61, %v2287_v13  ;;  %1709 = vmatpush3.bf16.msra.mxu1 %v2267_v6  ;;  %v852_v63 = vmax.f32 %v794_v58, 0.0 }
 0x1d7   :  { %v799_v2 = vpop.f32.mrf.mxu0  ;;  %1702 = vmatprep.subr.bf16.mxu1 %v2270_v7 }
 0x1d8   :  { %v853_v11 = vmax.f32 %v796_v62, 0.0  ;;  %v876_v16 = vpack.c.bf16 %v852_v63, %v850_v5  ;;  %v800_v6 = vadd.f32 %v799_v2, %v2290_v14 }
 0x1d9   :  { %v801_v12 = vpop.f32.mrf.mxu0 }
 0x1da   :  { %v877_v15 = vpack.c.bf16 %v853_v11, %v851_v4  ;;  %1710 = vmatpush3.bf16.msra.mxu1 %v2273_v8  ;;  %v802_v18 = vadd.f32 %v801_v12, %v2287_v13  ;;  %v854_v23 = vmax.f32 %v800_v6, 0.0  ;;  %v1835_v4 = vld [vmem:[#allocation5 + $0x40] sm:$0xff]  }
 0x1db   :  { %v803_v17 = vpop.f32.mrf.mxu0  ;;  %1703 = vmatprep.subr.bf16.mxu1 %v2276_v9  ;;  %v1836_v11 = vld [vmem:[#allocation5] sm:$0xff]   ;;  %1647 = vmatprep.subr.bf16.mxu0 %v1835_v4 }
 0x1dc   :  { %v804_v19 = vadd.f32 %v803_v17, %v2290_v14  ;;  %1152 = vmatprep.mubr.bf16.mxu1 %v877_v15  ;;  %v855_v8 = vmax.f32 %v802_v18, 0.0  ;;  %1648 = vmatpush3.bf16.msra.mxu0 %v1836_v11 }
 0x1dd   :  { %v805_v20 = vpop.f32.mrf.mxu0  ;;  %1153 = vmatmul.mubr.bf16.gmra.mxu1 %v876_v16 }
 0x1de   :  { %v806_v7 = vadd.f32 %v805_v20, %v2287_v13  ;;  %1711 = vmatpush3.bf16.msra.mxu1 %v2279_v10  ;;  %v856_v0 = vmax.f32 %v804_v19, 0.0 }
 0x1df   :  { %v809_v21 = vpop.f32.mrf.mxu0  ;;  %1704 = vmatprep.subr.bf16.mxu1 %v1835_v4 }
 0x1e0   :  { %v857_v22 = vmax.f32 %v806_v7, 0.0  ;;  %v878_v25 = vpack.c.bf16 %v856_v0, %v854_v23  ;;  %v810_v29 = vadd.f32 %v809_v21, %v2290_v14 }
 0x1e1   :  { %v811_v24 = vpop.f32.mrf.mxu0 }
 0x1e2   :  { %v879_v9 = vpack.c.bf16 %v857_v22, %v855_v8  ;;  %v812_v27 = vadd.f32 %v811_v24, %v2287_v13  ;;  %v858_v35 = vmax.f32 %v810_v29, 0.0  ;;  %1712 = vmatpush3.bf16.msra.mxu1 %v1836_v11 }
 0x1e3   :  { %v813_v26 = vpop.f32.mrf.mxu0 }
 0x1e4   :  { %v814_v28 = vadd.f32 %v813_v26, %v2290_v14  ;;  %1162 = vmatprep.mubr.bf16.mxu1 %v879_v9  ;;  %v859_v33 = vmax.f32 %v812_v27, 0.0 }
 0x1e5   :  { %v815_v30 = vpop.f32.mrf.mxu0  ;;  %1163 = vmatmul.mubr.bf16.gmra.mxu1 %v878_v25 }
 0x1e6   :  { %v816_v10 = vadd.f32 %v815_v30, %v2287_v13  ;;  %v860_v31 = vmax.f32 %v814_v28, 0.0 }
 0x1e7   :  { %v819_v32 = vpop.f32.mrf.mxu0 }
 0x1e8   :  { %v861_v34 = vmax.f32 %v816_v10, 0.0  ;;  %v880_v38 = vpack.c.bf16 %v860_v31, %v858_v35  ;;  %v820_v42 = vadd.f32 %v819_v32, %v2290_v14 }
 0x1e9   :  { %v821_v36 = vpop.f32.mrf.mxu0 }
 0x1ea   :  { %v881_v37 = vpack.c.bf16 %v861_v34, %v859_v33  ;;  %v822_v40 = vadd.f32 %v821_v36, %v2287_v13  ;;  %v862_v49 = vmax.f32 %v820_v42, 0.0 }
 0x1eb   :  { %v823_v39 = vpop.f32.mrf.mxu0 }
 0x1ec   :  { %v824_v41 = vadd.f32 %v823_v39, %v2290_v14  ;;  %1172 = vmatprep.mubr.bf16.mxu1 %v881_v37  ;;  %v863_v47 = vmax.f32 %v822_v40, 0.0 }
 0x1ed   :  { %v825_v43 = vpop.f32.mrf.mxu0  ;;  %1173 = vmatmul.mubr.bf16.gmra.mxu1 %v880_v38 }
 0x1ee   :  { %v826_v44 = vadd.f32 %v825_v43, %v2287_v13  ;;  %v864_v45 = vmax.f32 %v824_v41, 0.0 }
 0x1ef   :  { %v829_v46 = vpop.f32.mrf.mxu0 }
 0x1f0   :  { %v865_v48 = vmax.f32 %v826_v44, 0.0  ;;  %v882_v52 = vpack.c.bf16 %v864_v45, %v862_v49  ;;  %v830_v3 = vadd.f32 %v829_v46, %v2290_v14 }
 0x1f1   :  { %v831_v50 = vpop.f32.mrf.mxu0 }
 0x1f2   :  { %v883_v51 = vpack.c.bf16 %v865_v48, %v863_v47  ;;  %v832_v54 = vadd.f32 %v831_v50, %v2287_v13  ;;  %v866_v62 = vmax.f32 %v830_v3, 0.0 }
 0x1f3   :  { %v833_v53 = vpop.f32.mrf.mxu0 }
 0x1f4   :  { %v834_v55 = vadd.f32 %v833_v53, %v2290_v14  ;;  %1182 = vmatprep.mubr.bf16.mxu1 %v883_v51  ;;  %v867_v60 = vmax.f32 %v832_v54, 0.0  ;;  %v918_v14 = vld [vmem:[%s2406_s8] sm:$0x3] }
 0x1f5   :  { %v835_v57 = vpop.f32.mrf.mxu0  ;;  %1183 = vmatmul.mubr.bf16.gmra.mxu1 %v882_v52  ;;  %v2340_v12 = vrot.slane %v918_v14, %v2213_v59 }
 0x1f6   :  { %v836_v1 = vadd.f32 %v835_v57, %v2287_v13  ;;  %v868_v58 = vmax.f32 %v834_v55, 0.0  ;;  %v2337_v13 = vrot.slane %v918_v14, %v2211_v56 }
 0x1f8   :  { %v869_v61 = vmax.f32 %v836_v1, 0.0  ;;  %v884_v2 = vpack.c.bf16 %v868_v58, %v866_v62 }
 0x1fa   :  { %v885_v63 = vpack.c.bf16 %v869_v61, %v867_v60 }
 0x1fc   :  { %1192 = vmatprep.mubr.bf16.mxu1 %v885_v63 }
 0x1fd   :  { %1193 = vmatmul.mubr.bf16.gmra.mxu1 %v884_v2 }
 0x285   :  { %v1124_v5 = vpop.f32.mrf.mxu1 }
 0x286   :  { %v1125_v19 = vadd.f32 %v1124_v5, %v2340_v12 }
 0x287   :  { %v1126_v15 = vpop.f32.mrf.mxu1 }
 0x288   :  { %v1127_v17 = vadd.f32 %v1126_v15, %v2337_v13  ;;  %v1203_v56 = vmax.f32 %v1125_v19, 0.0 }
 0x289   :  { %v1128_v16 = vpop.f32.mrf.mxu1 }
 0x28a   :  { %v1129_v18 = vadd.f32 %v1128_v16, %v2340_v12  ;;  %v1204_v21 = vmax.f32 %v1127_v17, 0.0 }
 0x28b   :  { %v1130_v6 = vpop.f32.mrf.mxu1 }
 0x28c   :  { %v1131_v20 = vadd.f32 %v1130_v6, %v2337_v13  ;;  %v1205_v7 = vmax.f32 %v1129_v18, 0.0 }
 0x28d   :  { %v1134_v0 = vpop.f32.mrf.mxu1 }
 0x28e   :  { %v1206_v8 = vmax.f32 %v1131_v20, 0.0  ;;  %v1235_v59 = vpack.c.bf16 %v1205_v7, %v1203_v56  ;;  %v1135_v26 = vadd.f32 %v1134_v0, %v2340_v12 }
 0x28f   :  { %v1136_v22 = vpop.f32.mrf.mxu1 }
 0x290   :  { %v1236_v23 = vpack.c.bf16 %v1206_v8, %v1204_v21  ;;  %v1137_v9 = vadd.f32 %v1136_v22, %v2337_v13  ;;  %v1207_v32 = vmax.f32 %v1135_v26, 0.0 }
 0x291   :  { %v1138_v24 = vpop.f32.mrf.mxu1 }
 0x292   :  { %v1139_v25 = vadd.f32 %v1138_v24, %v2340_v12  ;;  %1418 = vmatprep.mubr.bf16.mxu0 %v1236_v23  ;;  %v1208_v10 = vmax.f32 %v1137_v9, 0.0 }
 0x293   :  { %v1140_v27 = vpop.f32.mrf.mxu1  ;;  %1419 = vmatmul.mubr.bf16.vlgmr.msra.gmra.mxu0 %v1235_v59 }
 0x294   :  { %v1141_v28 = vadd.f32 %v1140_v27, %v2337_v13  ;;  %v1209_v29 = vmax.f32 %v1139_v25, 0.0 }
 0x295   :  { %v1144_v30 = vpop.f32.mrf.mxu1 }
 0x296   :  { %v1210_v31 = vmax.f32 %v1141_v28, 0.0  ;;  %v1237_v35 = vpack.c.bf16 %v1209_v29, %v1207_v32  ;;  %v1145_v39 = vadd.f32 %v1144_v30, %v2340_v12 }
 0x297   :  { %v1146_v33 = vpop.f32.mrf.mxu1 }
 0x298   :  { %v1238_v34 = vpack.c.bf16 %v1210_v31, %v1208_v10  ;;  %v1147_v37 = vadd.f32 %v1146_v33, %v2337_v13  ;;  %v1211_v46 = vmax.f32 %v1145_v39, 0.0 }
 0x299   :  { %v1148_v36 = vpop.f32.mrf.mxu1 }
 0x29a   :  { %v1149_v38 = vadd.f32 %v1148_v36, %v2340_v12  ;;  %1426 = vmatprep.mubr.bf16.mxu0 %v1238_v34  ;;  %v1212_v44 = vmax.f32 %v1147_v37, 0.0 }
 0x29b   :  { %v1150_v40 = vpop.f32.mrf.mxu1  ;;  %1427 = vmatmul.mubr.bf16.gmra.mxu0 %v1237_v35 }
 0x29c   :  { %v1151_v41 = vadd.f32 %v1150_v40, %v2337_v13  ;;  %v1213_v42 = vmax.f32 %v1149_v38, 0.0 }
 0x29d   :  { %v1154_v43 = vpop.f32.mrf.mxu1 }
 0x29e   :  { %v1214_v45 = vmax.f32 %v1151_v41, 0.0  ;;  %v1239_v49 = vpack.c.bf16 %v1213_v42, %v1211_v46  ;;  %v1155_v53 = vadd.f32 %v1154_v43, %v2340_v12 }
 0x29f   :  { %v1156_v47 = vpop.f32.mrf.mxu1 }
 0x2a0   :  { %v1240_v48 = vpack.c.bf16 %v1214_v45, %v1212_v44  ;;  %v1157_v51 = vadd.f32 %v1156_v47, %v2337_v13  ;;  %v1215_v60 = vmax.f32 %v1155_v53, 0.0 }
 0x2a1   :  { %v1158_v50 = vpop.f32.mrf.mxu1 }
 0x2a2   :  { %v1159_v52 = vadd.f32 %v1158_v50, %v2340_v12  ;;  %1434 = vmatprep.mubr.bf16.mxu0 %v1240_v48  ;;  %v1216_v1 = vmax.f32 %v1157_v51, 0.0 }
 0x2a3   :  { %v1160_v54 = vpop.f32.mrf.mxu1  ;;  %1435 = vmatmul.mubr.bf16.gmra.mxu0 %v1239_v49 }
 0x2a4   :  { %v1161_v55 = vadd.f32 %v1160_v54, %v2337_v13  ;;  %v1217_v3 = vmax.f32 %v1159_v52, 0.0 }
 0x2a5   :  { %v1164_v57 = vpop.f32.mrf.mxu1 }
 0x2a6   :  { %v1218_v58 = vmax.f32 %v1161_v55, 0.0  ;;  %v1241_v63 = vpack.c.bf16 %v1217_v3, %v1215_v60  ;;  %v1165_v14 = vadd.f32 %v1164_v57, %v2340_v12 }
 0x2a7   :  { %v1166_v61 = vpop.f32.mrf.mxu1 }
 0x2a8   :  { %v1242_v62 = vpack.c.bf16 %v1218_v58, %v1216_v1  ;;  %v1167_v4 = vadd.f32 %v1166_v61, %v2337_v13  ;;  %v1219_v6 = vmax.f32 %v1165_v14, 0.0  ;;  %v2377_v1 = vld [vmem:[%s2408_s10] ss:$0 sm:$0xff]  ;;  %s1911_s10 = smov [#allocation7]  }
 0x2a9   :  { %v1168_v2 = vpop.f32.mrf.mxu1  ;;  %s1522_s29 = sshll.u32 %s1911_s10, 4  ;;  %s1523_s29 = int_to_ptr.vmem [resolvable:$true] %s1522_s29 }
 0x2aa   :  { %v1169_v11 = vadd.f32 %v1168_v2, %v2340_v12  ;;  %1442 = vmatprep.mubr.bf16.mxu0 %v1242_v62  ;;  %v1220_v18 = vmax.f32 %v1167_v4, 0.0  ;;  %s1877_s30 = scalar_lea.vmem %s1523_s29, 16  ;;  %s1881_s7 = scalar_lea.vmem %s1523_s29, 32 }
 0x2ab   :  { %v1170_v5 = vpop.f32.mrf.mxu1  ;;  %1443 = vmatmul.mubr.bf16.gmra.mxu0 %v1241_v63  ;;  %p1878_p10 = scmp.ne.s32.totalorder %s1523_s29, %s1877_s30  ;;  %p1882_p11 = scmp.lt.s32.totalorder %s1523_s29, %s1523_s29 }
 0x2ac   :  { %v1171_v15 = vadd.f32 %v1170_v5, %v2337_v13  ;;  %v1221_v16 = vmax.f32 %v1169_v11, 0.0  ;;  %p1883_p12 = scmp.lt.s32.totalorder %s1881_s7, %s1877_s30 }
 0x2ad   :  { %v1174_v17 = vpop.f32.mrf.mxu1 }
 0x2ae   :  { %v1222_v19 = vmax.f32 %v1171_v15, 0.0  ;;  %v1243_v0 = vpack.c.bf16 %v1221_v16, %v1219_v6  ;;  %v1175_v22 = vadd.f32 %v1174_v17, %v2340_v12  ;;  %p1884_p13 = por %p1883_p12, %p1882_p11 }
 0x2af   :  { %v1176_v20 = vpop.f32.mrf.mxu1 }
 0x2b0   :  { %v1244_v7 = vpack.c.bf16 %v1222_v19, %v1220_v18  ;;  %v1177_v8 = vadd.f32 %v1176_v20, %v2337_v13  ;;  %v1223_v27 = vmax.f32 %v1175_v22, 0.0  ;;  %p1885_p0 = pnand %p1884_p13, %p1878_p10 }
 0x2b1   :  { %v1178_v21 = vpop.f32.mrf.mxu1 }
 0x2b2   :  { %v1179_v56 = vadd.f32 %v1178_v21, %v2340_v12  ;;  %1450 = vmatprep.mubr.bf16.mxu1 %v1244_v7  ;;  %v1224_v25 = vmax.f32 %v1177_v8, 0.0 }
 0x2b3   :  { %v1180_v23 = vpop.f32.mrf.mxu1  ;;  %1451 = vmatmul.mubr.bf16.vlgmr.msra.gmra.mxu1 %v1243_v0 }
 0x2b4   :  { %v1181_v59 = vadd.f32 %v1180_v23, %v2337_v13  ;;  %v1225_v24 = vmax.f32 %v1179_v56, 0.0 }
 0x2b5   :  { %v1184_v9 = vpop.f32.mrf.mxu1 }
 0x2b6   :  { %v1226_v26 = vmax.f32 %v1181_v59, 0.0  ;;  %v1245_v30 = vpack.c.bf16 %v1225_v24, %v1223_v27  ;;  %v1185_v33 = vadd.f32 %v1184_v9, %v2340_v12 }
 0x2b7   :  { %v1186_v28 = vpop.f32.mrf.mxu1 }
 0x2b8   :  { %v1246_v29 = vpack.c.bf16 %v1226_v26, %v1224_v25  ;;  %v1187_v31 = vadd.f32 %v1186_v28, %v2337_v13  ;;  %v1227_v40 = vmax.f32 %v1185_v33, 0.0 }
 0x2b9   :  { %v1188_v10 = vpop.f32.mrf.mxu1 }
 0x2ba   :  { %v1189_v32 = vadd.f32 %v1188_v10, %v2340_v12  ;;  %1458 = vmatprep.mubr.bf16.mxu1 %v1246_v29  ;;  %v1228_v38 = vmax.f32 %v1187_v31, 0.0 }
 0x2bb   :  { %v1190_v34 = vpop.f32.mrf.mxu1  ;;  %1459 = vmatmul.mubr.bf16.gmra.mxu1 %v1245_v30 }
 0x2bc   :  { %v1191_v35 = vadd.f32 %v1190_v34, %v2337_v13  ;;  %v1229_v36 = vmax.f32 %v1189_v32, 0.0 }
 0x2bd   :  { %v1194_v37 = vpop.f32.mrf.mxu1 }
 0x2be   :  { %v1230_v39 = vmax.f32 %v1191_v35, 0.0  ;;  %v1247_v43 = vpack.c.bf16 %v1229_v36, %v1227_v40  ;;  %v1195_v47 = vadd.f32 %v1194_v37, %v2340_v12 }
 0x2bf   :  { %v1196_v41 = vpop.f32.mrf.mxu1 }
 0x2c0   :  { %v1248_v42 = vpack.c.bf16 %v1230_v39, %v1228_v38  ;;  %v1197_v45 = vadd.f32 %v1196_v41, %v2337_v13  ;;  %v1231_v53 = vmax.f32 %v1195_v47, 0.0 }
 0x2c1   :  { %v1198_v44 = vpop.f32.mrf.mxu1 }
 0x2c2   :  { %v1199_v46 = vadd.f32 %v1198_v44, %v2340_v12  ;;  %1466 = vmatprep.mubr.bf16.mxu1 %v1248_v42  ;;  %v1232_v51 = vmax.f32 %v1197_v45, 0.0 }
 0x2c3   :  { %v1200_v48 = vpop.f32.mrf.mxu1  ;;  %1467 = vmatmul.mubr.bf16.gmra.mxu1 %v1247_v43 }
 0x2c4   :  { %v1201_v49 = vadd.f32 %v1200_v48, %v2337_v13  ;;  %v1233_v50 = vmax.f32 %v1199_v46, 0.0 }
 0x2c6   :  { %v1234_v52 = vmax.f32 %v1201_v49, 0.0  ;;  %v1249_v55 = vpack.c.bf16 %v1233_v50, %v1231_v53 }
 0x2c8   :  { %v1250_v54 = vpack.c.bf16 %v1234_v52, %v1232_v51 }
 0x2ca   :  { %1474 = vmatprep.mubr.bf16.mxu1 %v1250_v54 }
 0x2cb   :  { %1475 = vmatmul.mubr.bf16.gmra.mxu1 %v1249_v55 }
 0x353   :  { %v1649_v3 = vpop.f32.mrf.mxu0 }
 0x355   :  { %v1650_v57 = vpop.f32.mrf.mxu0 }
 0x356   :  { %v1651_v12 = vadd.f32 %v1650_v57, %v1649_v3 }
 0x357   :  { %v1652_v58 = vpop.f32.mrf.mxu0 }
 0x358   :  { %v1421_v60 = vadd.f32 %v1651_v12, %v2377_v1 }
 0x359   :  { %v1653_v13 = vpop.f32.mrf.mxu0 }
 0x35a   :  { %v1654_v61 = vadd.f32 %v1653_v13, %v1652_v58  ;;  %1483 = vxpose.xlu0.b32.start [1/16] (narrow) %v1421_v60, 8 }
 0x35b   :  { %v1655_v62 = vpop.f32.mrf.mxu0 }
 0x35c   :  { %v1424_v63 = vadd.f32 %v1654_v61, %v2377_v1 }
 0x35d   :  { %v1656_v2 = vpop.f32.mrf.mxu0 }
 0x35e   :  { %v1657_v4 = vadd.f32 %v1656_v2, %v1655_v62  ;;  %1484 = vxpose.xlu0.b32.cont [2/16] (narrow) %v1424_v63, 8 }
 0x35f   :  { %v1658_v11 = vpop.f32.mrf.mxu0 }
 0x360   :  { %v1429_v14 = vadd.f32 %v1657_v4, %v2377_v1 }
 0x361   :  { %v1659_v5 = vpop.f32.mrf.mxu0 }
 0x362   :  { %v1660_v15 = vadd.f32 %v1659_v5, %v1658_v11  ;;  %1485 = vxpose.xlu0.b32.cont [3/16] (narrow) %v1429_v14, 8 }
 0x363   :  { %v1661_v16 = vpop.f32.mrf.mxu0 }
 0x364   :  { %v1432_v17 = vadd.f32 %v1660_v15, %v2377_v1 }
 0x365   :  { %v1662_v18 = vpop.f32.mrf.mxu0 }
 0x366   :  { %v1663_v19 = vadd.f32 %v1662_v18, %v1661_v16  ;;  %1486 = vxpose.xlu0.b32.cont [4/16] (narrow) %v1432_v17, 8 }
 0x367   :  { %v1664_v6 = vpop.f32.mrf.mxu0 }
 0x368   :  { %v1437_v20 = vadd.f32 %v1663_v19, %v2377_v1 }
 0x369   :  { %v1665_v7 = vpop.f32.mrf.mxu0 }
 0x36a   :  { %v1666_v0 = vadd.f32 %v1665_v7, %v1664_v6  ;;  %1487 = vxpose.xlu0.b32.cont [5/16] (narrow) %v1437_v20, 8 }
 0x36b   :  { %v1667_v21 = vpop.f32.mrf.mxu0 }
 0x36c   :  { %v1440_v8 = vadd.f32 %v1666_v0, %v2377_v1 }
 0x36d   :  { %v1668_v56 = vpop.f32.mrf.mxu0 }
 0x36e   :  { %v1669_v22 = vadd.f32 %v1668_v56, %v1667_v21  ;;  %1488 = vxpose.xlu0.b32.cont [6/16] (narrow) %v1440_v8, 8 }
 0x36f   :  { %v1670_v23 = vpop.f32.mrf.mxu0 }
 0x370   :  { %v1445_v59 = vadd.f32 %v1669_v22, %v2377_v1 }
 0x371   :  { %v1671_v24 = vpop.f32.mrf.mxu0 }
 0x372   :  { %v1672_v9 = vadd.f32 %v1671_v24, %v1670_v23  ;;  %1489 = vxpose.xlu0.b32.cont [7/16] (narrow) %v1445_v59, 8 }
 0x373   :  { %v1673_v25 = vpop.f32.mrf.mxu1 }
 0x374   :  { %v1448_v26 = vadd.f32 %v1672_v9, %v2377_v1 }
 0x375   :  { %v1674_v27 = vpop.f32.mrf.mxu1 }
 0x376   :  { %v1675_v28 = vadd.f32 %v1674_v27, %v1673_v25  ;;  %1490 = vxpose.xlu0.b32.cont [8/16] (narrow) %v1448_v26, 8 }
 0x377   :  { %v1676_v29 = vpop.f32.mrf.mxu1 }
 0x378   :  { %v1453_v30 = vadd.f32 %v1675_v28, %v2377_v1 }
 0x379   :  { %v1677_v10 = vpop.f32.mrf.mxu1 }
 0x37a   :  { %v1678_v31 = vadd.f32 %v1677_v10, %v1676_v29  ;;  %1491 = vxpose.xlu0.b32.cont [9/16] (narrow) %v1453_v30, 8 }
 0x37b   :  { %v1679_v32 = vpop.f32.mrf.mxu1 }
 0x37c   :  { %v1456_v33 = vadd.f32 %v1678_v31, %v2377_v1 }
 0x37d   :  { %v1680_v34 = vpop.f32.mrf.mxu1 }
 0x37e   :  { %v1681_v35 = vadd.f32 %v1680_v34, %v1679_v32  ;;  %1492 = vxpose.xlu0.b32.cont [10/16] (narrow) %v1456_v33, 8 }
 0x37f   :  { %v1682_v36 = vpop.f32.mrf.mxu1 }
 0x380   :  { %v1461_v37 = vadd.f32 %v1681_v35, %v2377_v1 }
 0x381   :  { %v1683_v38 = vpop.f32.mrf.mxu1 }
 0x382   :  { %v1684_v39 = vadd.f32 %v1683_v38, %v1682_v36  ;;  %1493 = vxpose.xlu0.b32.cont [11/16] (narrow) %v1461_v37, 8 }
 0x383   :  { %v1685_v40 = vpop.f32.mrf.mxu1 }
 0x384   :  { %v1464_v41 = vadd.f32 %v1684_v39, %v2377_v1 }
 0x385   :  { %v1686_v42 = vpop.f32.mrf.mxu1 }
 0x386   :  { %v1687_v43 = vadd.f32 %v1686_v42, %v1685_v40  ;;  %1494 = vxpose.xlu0.b32.cont [12/16] (narrow) %v1464_v41, 8 }
 0x387   :  { %v1688_v44 = vpop.f32.mrf.mxu1 }
 0x388   :  { %v1469_v45 = vadd.f32 %v1687_v43, %v2377_v1 }
 0x389   :  { %v1689_v46 = vpop.f32.mrf.mxu1 }
 0x38a   :  { %v1690_v47 = vadd.f32 %v1689_v46, %v1688_v44  ;;  %1495 = vxpose.xlu0.b32.cont [13/16] (narrow) %v1469_v45, 8 }
 0x38b   :  { %v1691_v48 = vpop.f32.mrf.mxu1 }
 0x38c   :  { %v1472_v49 = vadd.f32 %v1690_v47, %v2377_v1 }
 0x38d   :  { %v1692_v50 = vpop.f32.mrf.mxu1 }
 0x38e   :  { %v1693_v51 = vadd.f32 %v1692_v50, %v1691_v48  ;;  %1496 = vxpose.xlu0.b32.cont [14/16] (narrow) %v1472_v49, 8 }
 0x38f   :  { %v1694_v52 = vpop.f32.mrf.mxu1 }
 0x390   :  { %v1477_v53 = vadd.f32 %v1693_v51, %v2377_v1 }
 0x391   :  { %v1695_v54 = vpop.f32.mrf.mxu1 }
 0x392   :  { %v1696_v55 = vadd.f32 %v1695_v54, %v1694_v52  ;;  %1497 = vxpose.xlu0.b32.cont [15/16] (narrow) %v1477_v53, 8 }
 0x394   :  { %v1480_v3 = vadd.f32 %v1696_v55, %v2377_v1 }
 0x396   :  { %1498 = vxpose.xlu0.b32.end [16/16] (narrow) %v1480_v3, 8 }
 0x3d6   :  { %v1499_v57 = vpop.trf.xlu0 }
 0x3d7   :  { %1515 = vst [vmem:[#allocation7] sm:$0x1] %v1499_v57 }
 0x3d8   :  { %1888 = shalt.err (!%p1885_p0)
}
 0x3d9   :  { %1525 = dma.vmem_to_hbm [thread:$0]  %s1523_s29, 16, %s2409_s11, [#allocation4]  }
 0x3da   :  { %1901 = dma.done.wait [#allocation4], 16  }
 0x3db   :  { %1902 = vsyncadd [#allocation4], 4294967280 }
 0x3dc   :  { %1529 = vsyncpa [#allocation3], 1 }
 0x3dd   :  { %1530 = vsyncpa [#allocation6], 1 }
 0x3de   :  { %1531 = vsyncpa [#allocation4], 1 }

</bundles_post_ra>
